<compile_context>
chip_gen: v5e
topology: v5e:2x2
jax: 0.10.0
libtpu: 0.0.40
codegen_flags: <defaults>
</compile_context>

<pallas_src>
import functools

import jax
import jax.numpy as jnp
from jax.experimental import pallas as pl
from jax.experimental.pallas import tpu as pltpu


# ---------------------------------------------------------------------------
# Tiled linear:  y = x @ W + b   (bf16 MXU operands, f32 accumulation)
# ---------------------------------------------------------------------------
def _linear_kernel(x_ref, w_ref, b_ref, o_ref, acc_ref):
    k = pl.program_id(2)

    @pl.when(k == 0)
    def _():
        acc_ref[...] = jnp.zeros_like(acc_ref)

    # Weights are already bf16 (cast once at parameter setup); activations may
    # be f32 (first layer input) or bf16 (attention output) — cast is a no-op
    # when already bf16.
    acc_ref[...] += jnp.dot(
        x_ref[...].astype(jnp.bfloat16),
        w_ref[...],
        preferred_element_type=jnp.float32,
    )

    @pl.when(k == pl.num_programs(2) - 1)
    def _():
        o_ref[...] = (acc_ref[...] + b_ref[...].astype(jnp.float32)).astype(o_ref.dtype)


def _pick_tile(dim, cap, align):
    """Return (tile, padded_dim).

    Prefers the full dim (if <= cap) or the largest align-multiple divisor
    <= cap.  If neither exists, falls back to a cap-sized aligned tile with
    zero padding of the array (handled by the caller) — never a full-dim
    block that could exceed the VMEM budget.
    """
    if dim <= cap:
        return dim, dim
    t = (cap // align) * align
    while t >= align:
        if dim % t == 0:
            return t, dim
        t -= align
    t = (cap // align) * align
    padded = ((dim + t - 1) // t) * t
    return t, padded


def linear(x, w, b, *, out_dtype=None, tm_cap=512, tn_cap=512, tk_cap=512):
    """y = x @ w + b with M/N/K tiling, f32 accumulator scratch, bf16 MXU inputs."""
    M, K = x.shape
    K2, N = w.shape
    assert K == K2 and b.shape == (N,)
    if out_dtype is None:
        out_dtype = x.dtype
    if w.dtype != jnp.bfloat16:           # weights should already be bf16 at setup
        w = w.astype(jnp.bfloat16)

    tm, Mp = _pick_tile(M, tm_cap, 8)
    tn, Np = _pick_tile(N, tn_cap, 128)
    tk, Kp = _pick_tile(K, tk_cap, 128)

    # Zero-pad only when no aligned divisor existed (correctness-preserving).
    if Mp != M or Kp != K:
        x = jnp.pad(x, ((0, Mp - M), (0, Kp - K)))
    if Kp != K or Np != N:
        w = jnp.pad(w, ((0, Kp - K), (0, Np - N)))
    if Np != N:
        b = jnp.pad(b, (0, Np - N))

    grid = (Mp // tm, Np // tn, Kp // tk)

    out = pl.pallas_call(
        _linear_kernel,
        out_shape=jax.ShapeDtypeStruct((Mp, Np), out_dtype),
        grid_spec=pltpu.PrefetchScalarGridSpec(
            num_scalar_prefetch=0,
            grid=grid,
            in_specs=[
                pl.BlockSpec((tm, tk), lambda i, j, k: (i, k)),
                pl.BlockSpec((tk, tn), lambda i, j, k: (k, j)),
                pl.BlockSpec((1, tn), lambda i, j, k: (0, j)),
            ],
            out_specs=pl.BlockSpec((tm, tn), lambda i, j, k: (i, j)),
            scratch_shapes=[pltpu.VMEM((tm, tn), jnp.float32)],
        ),
        compiler_params=pltpu.CompilerParams(
            dimension_semantics=("parallel", "parallel", "arbitrary"),
            vmem_limit_bytes=32 * 1024 * 1024,   # fits v7x's 64 MiB physical VMEM
        ),
    )(x, w, b.reshape(1, Np))

    if Mp != M or Np != N:
        out = out[:M, :N]
    return out


# ---------------------------------------------------------------------------
# Flash-style causal attention: grid = (B, q_tiles, kv_tiles), online softmax.
# ---------------------------------------------------------------------------
def _attn_kernel(q_ref, k_ref, v_ref, o_ref, m_sc, l_sc, acc_sc, *, n_head, scale):
    # q_ref: (1, tq, C)   k_ref/v_ref: (1, tk, C)   o_ref: (1, tq, C)
    _, tq, C = q_ref.shape
    _, tk, _ = k_ref.shape
    D = C // n_head

    qi = pl.program_id(1)
    ki = pl.program_id(2)

    @pl.when(ki == 0)
    def _():
        m_sc[...] = jnp.full_like(m_sc, -1e30)
        l_sc[...] = jnp.zeros_like(l_sc)
        acc_sc[...] = jnp.zeros_like(acc_sc)

    kv_start = ki * tk
    q_last = qi * tq + (tq - 1)

    # Skip kv tiles that are entirely in the causal future (halves the flops).
    @pl.when(kv_start <= q_last)
    def _():
        q = q_ref[0]
        q = q * jnp.array(scale, dtype=q.dtype)          # fold 1/sqrt(D) into q
        q = q.reshape(tq, n_head, D)
        k = k_ref[0].reshape(tk, n_head, D)
        v = v_ref[0].reshape(tk, n_head, D)

        # All heads at once: contract on head_dim, batch on head (no k.T).
        s = jnp.einsum("qhd,khd->hqk", q, k,
                       preferred_element_type=jnp.float32)          # (H, tq, tk)

        row = qi * tq + jax.lax.broadcasted_iota(jnp.int32, (tq, tk), 0)
        col = kv_start + jax.lax.broadcasted_iota(jnp.int32, (tq, tk), 1)
        s = jnp.where((col <= row)[None, :, :], s, jnp.float32(-1e30))

        m_prev = m_sc[...]
        m_new = jnp.maximum(m_prev, jnp.max(s, axis=-1, keepdims=True))
        alpha = jnp.exp(m_prev - m_new)
        p = jnp.exp(s - m_new)

        l_sc[...] = alpha * l_sc[...] + jnp.sum(p, axis=-1, keepdims=True)
        acc_sc[...] = alpha * acc_sc[...] + jnp.einsum(
            "hqk,khd->hqd", p.astype(jnp.bfloat16), v,
            preferred_element_type=jnp.float32)
        m_sc[...] = m_new

    @pl.when(ki == pl.num_programs(2) - 1)
    def _():
        y = acc_sc[...] * pl.reciprocal(l_sc[...], approx=True)     # (H, tq, D)
        o_ref[0] = jnp.transpose(y, (1, 0, 2)).reshape(tq, C).astype(o_ref.dtype)


def _pick_seq_tile(dim, cap):
    if dim <= cap:
        return dim
    t = (cap // 8) * 8
    while t >= 8:
        if dim % t == 0:
            return t
        t -= 8
    return dim   # no aligned divisor: take the full sequence (always legal)


def causal_attention(qkv, n_head, *, tq_cap=256, tk_cap=256):
    """qkv: (B, T, 3C) fused along channels -> (B, T, C) attention output."""
    B, T, C3 = qkv.shape
    C = C3 // 3
    D = C // n_head
    assert C % 128 == 0, "n_embd must be a multiple of 128 for lane-aligned blocks"

    tq = _pick_seq_tile(T, tq_cap)
    tk = _pick_seq_tile(T, tk_cap)
    grid = (B, T // tq, T // tk)

    kern = functools.partial(_attn_kernel, n_head=n_head, scale=1.0 / float(D) ** 0.5)

    return pl.pallas_call(
        kern,
        out_shape=jax.ShapeDtypeStruct((B, T, C), qkv.dtype),
        grid_spec=pltpu.PrefetchScalarGridSpec(
            num_scalar_prefetch=0,
            grid=grid,
            in_specs=[
                # q / k / v are 128-aligned column blocks 0 / 1 / 2 of the fused qkv.
                pl.BlockSpec((1, tq, C), lambda b, qi, ki: (b, qi, 0)),
                pl.BlockSpec((1, tk, C), lambda b, qi, ki: (b, ki, 1)),
                pl.BlockSpec((1, tk, C), lambda b, qi, ki: (b, ki, 2)),
            ],
            out_specs=pl.BlockSpec((1, tq, C), lambda b, qi, ki: (b, qi, 0)),
            scratch_shapes=[
                pltpu.VMEM((n_head, tq, 1), jnp.float32),   # running max
                pltpu.VMEM((n_head, tq, 1), jnp.float32),   # running denom
                pltpu.VMEM((n_head, tq, D), jnp.float32),   # output accumulator
            ],
        ),
        compiler_params=pltpu.CompilerParams(
            dimension_semantics=("parallel", "parallel", "arbitrary"),
            vmem_limit_bytes=32 * 1024 * 1024,
        ),
    )(qkv, qkv, qkv)


# ---------------------------------------------------------------------------
# CausalSelfAttention forward (matches the PyTorch module semantics)
# ---------------------------------------------------------------------------
def causal_self_attention(params, x, n_head):
    B, T, C = x.shape
    # c_attn -> bf16 qkv (largest intermediate; halves its HBM round trip)
    qkv = linear(x.reshape(B * T, C), params["attn_w"], params["attn_b"],
                 out_dtype=jnp.bfloat16)                                  # (B*T, 3C)
    y = causal_attention(qkv.reshape(B, T, 3 * C), n_head)               # (B, T, C) bf16
    # c_proj -> back to the module's activation dtype
    y = linear(y.reshape(B * T, C), params["proj_w"], params["proj_b"],
               out_dtype=x.dtype)                                         # (B*T, C)
    return y.reshape(B, T, C)


# Pure-JAX reference for a tolerance check (f32 everywhere).
def _reference(params, x, n_head):
    B, T, C = x.shape
    D = C // n_head
    qkv = x @ params["attn_w"] + params["attn_b"]
    q, k, v = jnp.split(qkv, 3, axis=-1)

    def heads(t):
        return t.reshape(B, T, n_head, D).transpose(0, 2, 1, 3)

    q, k, v = heads(q), heads(k), heads(v)
    s = jnp.einsum("bhqd,bhkd->bhqk", q, k) / jnp.sqrt(jnp.float32(D))
    mask = jnp.tril(jnp.ones((T, T), dtype=bool))
    s = jnp.where(mask, s, -jnp.inf)
    p = jax.nn.softmax(s, axis=-1)
    y = jnp.einsum("bhqk,bhkd->bhqd", p, v)
    y = y.transpose(0, 2, 1, 3).reshape(B, T, C)
    return y @ params["proj_w"] + params["proj_b"]


if __name__ == "__main__":
    n_embd, n_head = 128, 4     # lane-dense channel dim; head_dim = 32
    B, T = 2, 8

    key = jax.random.PRNGKey(0)
    kx, kw1, kb1, kw2, kb2 = jax.random.split(key, 5)
    params_f32 = {
        "attn_w": (0.02 * jax.random.normal(kw1, (n_embd, 3 * n_embd))).astype(jnp.float32),
        "attn_b": (0.01 * jax.random.normal(kb1, (3 * n_embd,))).astype(jnp.float32),
        "proj_w": (0.02 * jax.random.normal(kw2, (n_embd, n_embd))).astype(jnp.float32),
        "proj_b": (0.01 * jax.random.normal(kb2, (n_embd,))).astype(jnp.float32),
    }
    # Kernel params: weights in bf16 (halves weight HBM traffic), biases f32.
    params = {
        "attn_w": params_f32["attn_w"].astype(jnp.bfloat16),
        "attn_b": params_f32["attn_b"],
        "proj_w": params_f32["proj_w"].astype(jnp.bfloat16),
        "proj_b": params_f32["proj_b"],
    }
    x = jax.random.normal(kx, (B, T, n_embd), dtype=jnp.float32)

    fwd = jax.jit(functools.partial(causal_self_attention, n_head=n_head))
    y = fwd(params, x)
    jax.block_until_ready(y)

    assert y.shape == (B, T, n_embd)
    assert y.dtype == jnp.float32
    assert bool(jnp.all(jnp.isfinite(y)))

    y_ref = _reference(params_f32, x, n_head)
    max_err = float(jnp.max(jnp.abs(y - y_ref)))
    assert max_err < 3e-2, f"max abs error {max_err}"   # bf16-MXU / bf16-activation tolerance

    print("KERNEL_OK")
</pallas_src>

<mosaic_0001>
module attributes {stable_mosaic.version = 11 : i64} {
  func.func @_linear_kernel(%arg0: i32, %arg1: i32, %arg2: i32, %arg3: memref<16x128xf32, #tpu.memory_space<vmem>>, %arg4: memref<128x384xbf16, #tpu.memory_space<vmem>>, %arg5: memref<1x384xf32, #tpu.memory_space<vmem>>, %arg6: memref<16x384xbf16, #tpu.memory_space<vmem>>, %arg7: memref<16x384xf32, #tpu.memory_space<vmem>>) attributes {dimension_semantics = [#tpu.dimension_semantics<parallel>, #tpu.dimension_semantics<parallel>, #tpu.dimension_semantics<arbitrary>], iteration_bounds = array<i64: 1, 1, 1>, scalar_prefetch = 0 : i64, scratch_operands = 1 : i64, tpu.core_type = #tpu.core_type<tc>, window_params = [{transform_indices = @transform_0, window_bounds = array<i64: 16, 128>}, {transform_indices = @transform_1, window_bounds = array<i64: 128, 384>}, {transform_indices = @transform_2, window_bounds = array<i64: 1, 384>}, {transform_indices = @transform_3, window_bounds = array<i64: 16, 384>}]} {
    %c0_i32 = arith.constant 0 : i32
    %0 = arith.cmpi eq, %arg2, %c0_i32 : i32
    %1 = arith.extui %0 : i1 to i32
    %c0_i32_0 = arith.constant 0 : i32
    %2 = arith.cmpi ne, %1, %c0_i32_0 : i32
    scf.if %2 {
      %cst_10 = arith.constant 0.000000e+00 : f32
      %13 = vector.broadcast %cst_10 : f32 to vector<16x384xf32>
      %c0_11 = arith.constant 0 : index
      %c0_12 = arith.constant 0 : index
      %14 = vector.load %arg7[%c0_11, %c0_12] : memref<16x384xf32, #tpu.memory_space<vmem>>, vector<16x384xf32>
      tpu.vector_store %arg7[%c0_11, %c0_12], %13 {strides = array<i32>} : memref<16x384xf32, #tpu.memory_space<vmem>>, vector<16x384xf32>,
    } else {
    }
    %c0 = arith.constant 0 : index
    %c0_1 = arith.constant 0 : index
    %3 = vector.load %arg7[%c0, %c0_1] : memref<16x384xf32, #tpu.memory_space<vmem>>, vector<16x384xf32>
    %c0_2 = arith.constant 0 : index
    %c0_3 = arith.constant 0 : index
    %4 = vector.load %arg3[%c0_2, %c0_3] : memref<16x128xf32, #tpu.memory_space<vmem>>, vector<16x128xf32>
    %5 = arith.truncf %4 : vector<16x128xf32> to vector<16x128xbf16>
    %c0_4 = arith.constant 0 : index
    %c0_5 = arith.constant 0 : index
    %6 = vector.load %arg4[%c0_4, %c0_5] : memref<128x384xbf16, #tpu.memory_space<vmem>>, vector<128x384xbf16>
    %cst = arith.constant dense<0.000000e+00> : vector<16x384xf32>
    %7 = tpu.matmul %5, %6, %cst {dimension_numbers = #tpu.dot_dimension_numbers<[1], [0], [0], [1], [0, 0, 1, 1], [], []>} : vector<16x128xbf16>, vector<128x384xbf16>, vector<16x384xf32> -> vector<16x384xf32>
    %8 = arith.addf %3, %7 : vector<16x384xf32>
    %c0_6 = arith.constant 0 : index
    %c0_7 = arith.constant 0 : index
    %9 = vector.load %arg7[%c0_6, %c0_7] : memref<16x384xf32, #tpu.memory_space<vmem>>, vector<16x384xf32>
    tpu.vector_store %arg7[%c0_6, %c0_7], %8 {strides = array<i32>} : memref<16x384xf32, #tpu.memory_space<vmem>>, vector<16x384xf32>,
    %c0_i32_8 = arith.constant 0 : i32
    %10 = arith.cmpi eq, %arg2, %c0_i32_8 : i32
    %11 = arith.extui %10 : i1 to i32
    %c0_i32_9 = arith.constant 0 : i32
    %12 = arith.cmpi ne, %11, %c0_i32_9 : i32
    scf.if %12 {
      %c0_10 = arith.constant 0 : index
      %c0_11 = arith.constant 0 : index
      %13 = vector.load %arg7[%c0_10, %c0_11] : memref<16x384xf32, #tpu.memory_space<vmem>>, vector<16x384xf32>
      %c0_12 = arith.constant 0 : index
      %c0_13 = arith.constant 0 : index
      %14 = vector.load %arg5[%c0_12, %c0_13] : memref<1x384xf32, #tpu.memory_space<vmem>>, vector<1x384xf32>
      %15 = vector.broadcast %14 : vector<1x384xf32> to vector<16x384xf32>
      %16 = arith.addf %13, %15 : vector<16x384xf32>
      %17 = arith.truncf %16 : vector<16x384xf32> to vector<16x384xbf16>
      %c0_14 = arith.constant 0 : index
      %c0_15 = arith.constant 0 : index
      %18 = vector.load %arg6[%c0_14, %c0_15] : memref<16x384xbf16, #tpu.memory_space<vmem>>, vector<16x384xbf16>
      tpu.vector_store %arg6[%c0_14, %c0_15], %17 {strides = array<i32>} : memref<16x384xbf16, #tpu.memory_space<vmem>>, vector<16x384xbf16>,
    } else {
    }
    return
  }
  func.func @transform_0(%arg0: i32, %arg1: i32, %arg2: i32) -> (i32, i32) {
    %c0_i32 = arith.constant 0 : i32
    return %arg0, %arg2 : i32, i32
  }
  func.func @transform_1(%arg0: i32, %arg1: i32, %arg2: i32) -> (i32, i32) {
    %c0_i32 = arith.constant 0 : i32
    return %arg2, %arg1 : i32, i32
  }
  func.func @transform_2(%arg0: i32, %arg1: i32, %arg2: i32) -> (i32, i32) {
    %c0_i32 = arith.constant 0 : i32
    %c0_i32_0 = arith.constant 0 : i32
    return %c0_i32, %arg1 : i32, i32
  }
  func.func @transform_3(%arg0: i32, %arg1: i32, %arg2: i32) -> (i32, i32) {
    %c0_i32 = arith.constant 0 : i32
    return %arg0, %arg1 : i32, i32
  }
}

module attributes {stable_mosaic.version = 11 : i64} {
  func.func @_attn_kernel(%arg0: i32, %arg1: i32, %arg2: i32, %arg3: memref<1x8x128xbf16, #tpu.memory_space<vmem>>, %arg4: memref<1x8x128xbf16, #tpu.memory_space<vmem>>, %arg5: memref<1x8x128xbf16, #tpu.memory_space<vmem>>, %arg6: memref<1x8x128xbf16, #tpu.memory_space<vmem>>, %arg7: memref<4x8x1xf32, #tpu.memory_space<vmem>>, %arg8: memref<4x8x1xf32, #tpu.memory_space<vmem>>, %arg9: memref<4x8x32xf32, #tpu.memory_space<vmem>>) attributes {dimension_semantics = [#tpu.dimension_semantics<parallel>, #tpu.dimension_semantics<parallel>, #tpu.dimension_semantics<arbitrary>], iteration_bounds = array<i64: 2, 1, 1>, scalar_prefetch = 0 : i64, scratch_operands = 3 : i64, tpu.core_type = #tpu.core_type<tc>, window_params = [{transform_indices = @transform_0, window_bounds = array<i64: 1, 8, 128>}, {transform_indices = @transform_1, window_bounds = array<i64: 1, 8, 128>}, {transform_indices = @transform_2, window_bounds = array<i64: 1, 8, 128>}, {transform_indices = @transform_3, window_bounds = array<i64: 1, 8, 128>}]} {
    %c0_i32 = arith.constant 0 : i32
    %0 = arith.cmpi eq, %arg2, %c0_i32 : i32
    %1 = arith.extui %0 : i1 to i32
    %c0_i32_0 = arith.constant 0 : i32
    %2 = arith.cmpi ne, %1, %c0_i32_0 : i32
    scf.if %2 {
      %cst = arith.constant -1.000000e+30 : f32
      %12 = vector.broadcast %cst : f32 to vector<4x8x1xf32>
      %c0 = arith.constant 0 : index
      %c0_5 = arith.constant 0 : index
      %c0_6 = arith.constant 0 : index
      %13 = vector.load %arg7[%c0, %c0_5, %c0_6] : memref<4x8x1xf32, #tpu.memory_space<vmem>>, vector<4x8x1xf32>
      tpu.vector_store %arg7[%c0, %c0_5, %c0_6], %12 {strides = array<i32>} : memref<4x8x1xf32, #tpu.memory_space<vmem>>, vector<4x8x1xf32>,
      %cst_7 = arith.constant 0.000000e+00 : f32
      %14 = vector.broadcast %cst_7 : f32 to vector<4x8x1xf32>
      %c0_8 = arith.constant 0 : index
      %c0_9 = arith.constant 0 : index
      %c0_10 = arith.constant 0 : index
      %15 = vector.load %arg8[%c0_8, %c0_9, %c0_10] : memref<4x8x1xf32, #tpu.memory_space<vmem>>, vector<4x8x1xf32>
      tpu.vector_store %arg8[%c0_8, %c0_9, %c0_10], %14 {strides = array<i32>} : memref<4x8x1xf32, #tpu.memory_space<vmem>>, vector<4x8x1xf32>,
      %cst_11 = arith.constant 0.000000e+00 : f32
      %16 = vector.broadcast %cst_11 : f32 to vector<4x8x32xf32>
      %c0_12 = arith.constant 0 : index
      %c0_13 = arith.constant 0 : index
      %c0_14 = arith.constant 0 : index
      %17 = vector.load %arg9[%c0_12, %c0_13, %c0_14] : memref<4x8x32xf32, #tpu.memory_space<vmem>>, vector<4x8x32xf32>
      tpu.vector_store %arg9[%c0_12, %c0_13, %c0_14], %16 {strides = array<i32>} : memref<4x8x32xf32, #tpu.memory_space<vmem>>, vector<4x8x32xf32>,
    } else {
    }
    %c8_i32 = arith.constant 8 : i32
    %3 = arith.muli %arg2, %c8_i32 : i32
    %c8_i32_1 = arith.constant 8 : i32
    %4 = arith.muli %arg1, %c8_i32_1 : i32
    %c7_i32 = arith.constant 7 : i32
    %5 = arith.addi %4, %c7_i32 : i32
    %6 = arith.cmpi sle, %3, %5 : i32
    %7 = arith.extui %6 : i1 to i32
    %c0_i32_2 = arith.constant 0 : i32
    %8 = arith.cmpi ne, %7, %c0_i32_2 : i32
    scf.if %8 {
      %c0 = arith.constant 0 : index
      %c0_5 = arith.constant 0 : index
      %c0_6 = arith.constant 0 : index
      %12 = vector.load %arg3[%c0, %c0_5, %c0_6] : memref<1x8x128xbf16, #tpu.memory_space<vmem>>, vector<1x8x128xbf16>
      %13 = vector.shape_cast %12 : vector<1x8x128xbf16> to vector<8x128xbf16>
      %cst = arith.constant 1.767580e-01 : bf16
      %14 = vector.broadcast %cst : bf16 to vector<8x128xbf16>
      %15 = arith.mulf %13, %14 : vector<8x128xbf16>
      %16 = vector.shape_cast %15 : vector<8x128xbf16> to vector<8x4x32xbf16>
      %c0_7 = arith.constant 0 : index
      %c0_8 = arith.constant 0 : index
      %c0_9 = arith.constant 0 : index
      %17 = vector.load %arg4[%c0_7, %c0_8, %c0_9] : memref<1x8x128xbf16, #tpu.memory_space<vmem>>, vector<1x8x128xbf16>
      %18 = vector.shape_cast %17 : vector<1x8x128xbf16> to vector<8x128xbf16>
      %19 = vector.shape_cast %18 : vector<8x128xbf16> to vector<8x4x32xbf16>
      %c0_10 = arith.constant 0 : index
      %c0_11 = arith.constant 0 : index
      %c0_12 = arith.constant 0 : index
      %20 = vector.load %arg5[%c0_10, %c0_11, %c0_12] : memref<1x8x128xbf16, #tpu.memory_space<vmem>>, vector<1x8x128xbf16>
      %21 = vector.shape_cast %20 : vector<1x8x128xbf16> to vector<8x128xbf16>
      %22 = vector.shape_cast %21 : vector<8x128xbf16> to vector<8x4x32xbf16>
      "tpu.trace_start"() <{level = 10 : i32, message = "qhd,khd->hqk"}> : () -> ()
      %cst_13 = arith.constant dense<0.000000e+00> : vector<4x8x8xf32>
      %23 = tpu.matmul %16, %19, %cst_13 {dimension_numbers = #tpu.dot_dimension_numbers<[2], [2], [0], [0], [0, 1, 0, 0, 1, 0], [1], [1]>} : vector<8x4x32xbf16>, vector<8x4x32xbf16>, vector<4x8x8xf32> -> vector<4x8x8xf32>
      "tpu.trace_stop"() : () -> ()
      %c8_i32_14 = arith.constant 8 : i32
      %24 = arith.muli %arg1, %c8_i32_14 : i32
      %25 = tpu.iota {dimensions = array<i32: 0>} : vector<8x8xi32>
      %26 = vector.broadcast %24 : i32 to vector<8x8xi32>
      %27 = arith.addi %26, %25 : vector<8x8xi32>
      %28 = tpu.iota {dimensions = array<i32: 1>} : vector<8x8xi32>
      %29 = vector.broadcast %3 : i32 to vector<8x8xi32>
      %30 = arith.addi %29, %28 : vector<8x8xi32>
      %31 = arith.cmpi sle, %30, %27 : vector<8x8xi32>
      %32 = vector.shape_cast %31 : vector<8x8xi1> to vector<1x8x8xi1>
      %cst_15 = arith.constant -1.000000e+30 : f32
      %33 = vector.shape_cast %32 : vector<1x8x8xi1> to vector<1x8x8xi1>
      %34 = vector.broadcast %33 : vector<1x8x8xi1> to vector<4x8x8xi1>
      %35 = vector.broadcast %cst_15 : f32 to vector<4x8x8xf32>
      %36 = arith.select %34, %23, %35 : vector<4x8x8xi1>, vector<4x8x8xf32>
      %c0_16 = arith.constant 0 : index
      %c0_17 = arith.constant 0 : index
      %c0_18 = arith.constant 0 : index
      %37 = vector.load %arg7[%c0_16, %c0_17, %c0_18] : memref<4x8x1xf32, #tpu.memory_space<vmem>>, vector<4x8x1xf32>
      %cst_19 = arith.constant dense<0xFF800000> : vector<4x8xf32>
      %38 = vector.multi_reduction <maximumf>, %36, %cst_19 [2] : vector<4x8x8xf32> to vector<4x8xf32>
      %39 = vector.shape_cast %38 : vector<4x8xf32> to vector<4x8x1xf32>
      %40 = arith.maximumf %37, %39 : vector<4x8x1xf32>
      %41 = arith.subf %37, %40 : vector<4x8x1xf32>
      %42 = math.exp %41 : vector<4x8x1xf32>
      %43 = vector.broadcast %40 : vector<4x8x1xf32> to vector<4x8x8xf32>
      %44 = arith.subf %36, %43 : vector<4x8x8xf32>
      %45 = math.exp %44 : vector<4x8x8xf32>
      %c0_20 = arith.constant 0 : index
      %c0_21 = arith.constant 0 : index
      %c0_22 = arith.constant 0 : index
      %46 = vector.load %arg8[%c0_20, %c0_21, %c0_22] : memref<4x8x1xf32, #tpu.memory_space<vmem>>, vector<4x8x1xf32>
      %47 = arith.mulf %42, %46 : vector<4x8x1xf32>
      %cst_23 = arith.constant dense<0.000000e+00> : vector<4x8xf32>
      %48 = vector.multi_reduction <add>, %45, %cst_23 [2] : vector<4x8x8xf32> to vector<4x8xf32>
      %49 = vector.shape_cast %48 : vector<4x8xf32> to vector<4x8x1xf32>
      %50 = arith.addf %47, %49 : vector<4x8x1xf32>
      %c0_24 = arith.constant 0 : index
      %c0_25 = arith.constant 0 : index
      %c0_26 = arith.constant 0 : index
      %51 = vector.load %arg8[%c0_24, %c0_25, %c0_26] : memref<4x8x1xf32, #tpu.memory_space<vmem>>, vector<4x8x1xf32>
      tpu.vector_store %arg8[%c0_24, %c0_25, %c0_26], %50 {strides = array<i32>} : memref<4x8x1xf32, #tpu.memory_space<vmem>>, vector<4x8x1xf32>,
      %c0_27 = arith.constant 0 : index
      %c0_28 = arith.constant 0 : index
      %c0_29 = arith.constant 0 : index
      %52 = vector.load %arg9[%c0_27, %c0_28, %c0_29] : memref<4x8x32xf32, #tpu.memory_space<vmem>>, vector<4x8x32xf32>
      %53 = vector.broadcast %42 : vector<4x8x1xf32> to vector<4x8x32xf32>
      %54 = arith.mulf %53, %52 : vector<4x8x32xf32>
      %55 = arith.truncf %45 : vector<4x8x8xf32> to vector<4x8x8xbf16>
      "tpu.trace_start"() <{level = 10 : i32, message = "hqk,khd->hqd"}> : () -> ()
      %cst_30 = arith.constant dense<0.000000e+00> : vector<4x8x32xf32>
      %56 = tpu.matmul %55, %22, %cst_30 {dimension_numbers = #tpu.dot_dimension_numbers<[2], [0], [1], [2], [0, 0, 0, 1, 1, 2], [0], [1]>} : vector<4x8x8xbf16>, vector<8x4x32xbf16>, vector<4x8x32xf32> -> vector<4x8x32xf32>
      "tpu.trace_stop"() : () -> ()
      %57 = arith.addf %54, %56 : vector<4x8x32xf32>
      %c0_31 = arith.constant 0 : index
      %c0_32 = arith.constant 0 : index
      %c0_33 = arith.constant 0 : index
      %58 = vector.load %arg9[%c0_31, %c0_32, %c0_33] : memref<4x8x32xf32, #tpu.memory_space<vmem>>, vector<4x8x32xf32>
      tpu.vector_store %arg9[%c0_31, %c0_32, %c0_33], %57 {strides = array<i32>} : memref<4x8x32xf32, #tpu.memory_space<vmem>>, vector<4x8x32xf32>,
      %c0_34 = arith.constant 0 : index
      %c0_35 = arith.constant 0 : index
      %c0_36 = arith.constant 0 : index
      %59 = vector.load %arg7[%c0_34, %c0_35, %c0_36] : memref<4x8x1xf32, #tpu.memory_space<vmem>>, vector<4x8x1xf32>
      tpu.vector_store %arg7[%c0_34, %c0_35, %c0_36], %40 {strides = array<i32>} : memref<4x8x1xf32, #tpu.memory_space<vmem>>, vector<4x8x1xf32>,
    } else {
    }
    %c0_i32_3 = arith.constant 0 : i32
    %9 = arith.cmpi eq, %arg2, %c0_i32_3 : i32
    %10 = arith.extui %9 : i1 to i32
    %c0_i32_4 = arith.constant 0 : i32
    %11 = arith.cmpi ne, %10, %c0_i32_4 : i32
    scf.if %11 {
      %c0 = arith.constant 0 : index
      %c0_5 = arith.constant 0 : index
      %c0_6 = arith.constant 0 : index
      %12 = vector.load %arg9[%c0, %c0_5, %c0_6] : memref<4x8x32xf32, #tpu.memory_space<vmem>>, vector<4x8x32xf32>
      %c0_7 = arith.constant 0 : index
      %c0_8 = arith.constant 0 : index
      %c0_9 = arith.constant 0 : index
      %13 = vector.load %arg8[%c0_7, %c0_8, %c0_9] : memref<4x8x1xf32, #tpu.memory_space<vmem>>, vector<4x8x1xf32>
      %14 = tpu.reciprocal %13 {approx = true} : vector<4x8x1xf32> -> vector<4x8x1xf32>
      %15 = vector.broadcast %14 : vector<4x8x1xf32> to vector<4x8x32xf32>
      %16 = arith.mulf %12, %15 : vector<4x8x32xf32>
      %17 = tpu.transpose %16, [1, 0, 2] : vector<4x8x32xf32> -> vector<8x4x32xf32>
      %18 = vector.shape_cast %17 : vector<8x4x32xf32> to vector<8x128xf32>
      %19 = arith.truncf %18 : vector<8x128xf32> to vector<8x128xbf16>
      %c0_10 = arith.constant 0 : index
      %c0_11 = arith.constant 0 : index
      %c0_12 = arith.constant 0 : index
      %20 = vector.load %arg6[%c0_10, %c0_11, %c0_12] : memref<1x8x128xbf16, #tpu.memory_space<vmem>>, vector<1x8x128xbf16>
      %21 = vector.shape_cast %20 : vector<1x8x128xbf16> to vector<8x128xbf16>
      %22 = vector.shape_cast %19 : vector<8x128xbf16> to vector<1x8x128xbf16>
      tpu.vector_store %arg6[%c0_10, %c0_11, %c0_12], %22 {strides = array<i32>} : memref<1x8x128xbf16, #tpu.memory_space<vmem>>, vector<1x8x128xbf16>,
    } else {
    }
    return
  }
  func.func @transform_0(%arg0: i32, %arg1: i32, %arg2: i32) -> (i32, i32, i32) {
    %c0_i32 = arith.constant 0 : i32
    %c0_i32_0 = arith.constant 0 : i32
    return %arg0, %arg1, %c0_i32 : i32, i32, i32
  }
  func.func @transform_1(%arg0: i32, %arg1: i32, %arg2: i32) -> (i32, i32, i32) {
    %c1_i32 = arith.constant 1 : i32
    %c0_i32 = arith.constant 0 : i32
    return %arg0, %arg2, %c1_i32 : i32, i32, i32
  }
  func.func @transform_2(%arg0: i32, %arg1: i32, %arg2: i32) -> (i32, i32, i32) {
    %c2_i32 = arith.constant 2 : i32
    %c0_i32 = arith.constant 0 : i32
    return %arg0, %arg2, %c2_i32 : i32, i32, i32
  }
  func.func @transform_3(%arg0: i32, %arg1: i32, %arg2: i32) -> (i32, i32, i32) {
    %c0_i32 = arith.constant 0 : i32
    %c0_i32_0 = arith.constant 0 : i32
    return %arg0, %arg1, %c0_i32 : i32, i32, i32
  }
}

module attributes {stable_mosaic.version = 11 : i64} {
  func.func @_linear_kernel(%arg0: i32, %arg1: i32, %arg2: i32, %arg3: memref<16x128xbf16, #tpu.memory_space<vmem>>, %arg4: memref<128x128xbf16, #tpu.memory_space<vmem>>, %arg5: memref<1x128xf32, #tpu.memory_space<vmem>>, %arg6: memref<16x128xf32, #tpu.memory_space<vmem>>, %arg7: memref<16x128xf32, #tpu.memory_space<vmem>>) attributes {dimension_semantics = [#tpu.dimension_semantics<parallel>, #tpu.dimension_semantics<parallel>, #tpu.dimension_semantics<arbitrary>], iteration_bounds = array<i64: 1, 1, 1>, scalar_prefetch = 0 : i64, scratch_operands = 1 : i64, tpu.core_type = #tpu.core_type<tc>, window_params = [{transform_indices = @transform_0, window_bounds = array<i64: 16, 128>}, {transform_indices = @transform_1, window_bounds = array<i64: 128, 128>}, {transform_indices = @transform_2, window_bounds = array<i64: 1, 128>}, {transform_indices = @transform_3, window_bounds = array<i64: 16, 128>}]} {
    %c0_i32 = arith.constant 0 : i32
    %0 = arith.cmpi eq, %arg2, %c0_i32 : i32
    %1 = arith.extui %0 : i1 to i32
    %c0_i32_0 = arith.constant 0 : i32
    %2 = arith.cmpi ne, %1, %c0_i32_0 : i32
    scf.if %2 {
      %cst_10 = arith.constant 0.000000e+00 : f32
      %12 = vector.broadcast %cst_10 : f32 to vector<16x128xf32>
      %c0_11 = arith.constant 0 : index
      %c0_12 = arith.constant 0 : index
      %13 = vector.load %arg7[%c0_11, %c0_12] : memref<16x128xf32, #tpu.memory_space<vmem>>, vector<16x128xf32>
      tpu.vector_store %arg7[%c0_11, %c0_12], %12 {strides = array<i32>} : memref<16x128xf32, #tpu.memory_space<vmem>>, vector<16x128xf32>,
    } else {
    }
    %c0 = arith.constant 0 : index
    %c0_1 = arith.constant 0 : index
    %3 = vector.load %arg7[%c0, %c0_1] : memref<16x128xf32, #tpu.memory_space<vmem>>, vector<16x128xf32>
    %c0_2 = arith.constant 0 : index
    %c0_3 = arith.constant 0 : index
    %4 = vector.load %arg3[%c0_2, %c0_3] : memref<16x128xbf16, #tpu.memory_space<vmem>>, vector<16x128xbf16>
    %c0_4 = arith.constant 0 : index
    %c0_5 = arith.constant 0 : index
    %5 = vector.load %arg4[%c0_4, %c0_5] : memref<128x128xbf16, #tpu.memory_space<vmem>>, vector<128x128xbf16>
    %cst = arith.constant dense<0.000000e+00> : vector<16x128xf32>
    %6 = tpu.matmul %4, %5, %cst {dimension_numbers = #tpu.dot_dimension_numbers<[1], [0], [0], [1], [0, 0, 1, 1], [], []>} : vector<16x128xbf16>, vector<128x128xbf16>, vector<16x128xf32> -> vector<16x128xf32>
    %7 = arith.addf %3, %6 : vector<16x128xf32>
    %c0_6 = arith.constant 0 : index
    %c0_7 = arith.constant 0 : index
    %8 = vector.load %arg7[%c0_6, %c0_7] : memref<16x128xf32, #tpu.memory_space<vmem>>, vector<16x128xf32>
    tpu.vector_store %arg7[%c0_6, %c0_7], %7 {strides = array<i32>} : memref<16x128xf32, #tpu.memory_space<vmem>>, vector<16x128xf32>,
    %c0_i32_8 = arith.constant 0 : i32
    %9 = arith.cmpi eq, %arg2, %c0_i32_8 : i32
    %10 = arith.extui %9 : i1 to i32
    %c0_i32_9 = arith.constant 0 : i32
    %11 = arith.cmpi ne, %10, %c0_i32_9 : i32
    scf.if %11 {
      %c0_10 = arith.constant 0 : index
      %c0_11 = arith.constant 0 : index
      %12 = vector.load %arg7[%c0_10, %c0_11] : memref<16x128xf32, #tpu.memory_space<vmem>>, vector<16x128xf32>
      %c0_12 = arith.constant 0 : index
      %c0_13 = arith.constant 0 : index
      %13 = vector.load %arg5[%c0_12, %c0_13] : memref<1x128xf32, #tpu.memory_space<vmem>>, vector<1x128xf32>
      %14 = vector.broadcast %13 : vector<1x128xf32> to vector<16x128xf32>
      %15 = arith.addf %12, %14 : vector<16x128xf32>
      %c0_14 = arith.constant 0 : index
      %c0_15 = arith.constant 0 : index
      %16 = vector.load %arg6[%c0_14, %c0_15] : memref<16x128xf32, #tpu.memory_space<vmem>>, vector<16x128xf32>
      tpu.vector_store %arg6[%c0_14, %c0_15], %15 {strides = array<i32>} : memref<16x128xf32, #tpu.memory_space<vmem>>, vector<16x128xf32>,
    } else {
    }
    return
  }
  func.func @transform_0(%arg0: i32, %arg1: i32, %arg2: i32) -> (i32, i32) {
    %c0_i32 = arith.constant 0 : i32
    return %arg0, %arg2 : i32, i32
  }
  func.func @transform_1(%arg0: i32, %arg1: i32, %arg2: i32) -> (i32, i32) {
    %c0_i32 = arith.constant 0 : i32
    return %arg2, %arg1 : i32, i32
  }
  func.func @transform_2(%arg0: i32, %arg1: i32, %arg2: i32) -> (i32, i32) {
    %c0_i32 = arith.constant 0 : i32
    %c0_i32_0 = arith.constant 0 : i32
    return %c0_i32, %arg1 : i32, i32
  }
  func.func @transform_3(%arg0: i32, %arg1: i32, %arg2: i32) -> (i32, i32) {
    %c0_i32 = arith.constant 0 : i32
    return %arg0, %arg1 : i32, i32
  }
}

</mosaic_0001>

<bundles_post_ra>
// kernel: causal_self_attention.5
= control target key start
LH: loop header
LB: loop body
LE: loop exit
PB: predicated region body
PF: predicated region fallthrough
CT: control target
= control target key end

     0   :  { %8 = vsyncpa [#allocation4], 0  ;;  %s303_s0 = inlined_call_operand.vmem [shape: bf16[16,128], index: 0, kind: input, shape index: {}]   ;;  %s304_s1 = inlined_call_operand.hbm [shape: bf16[128,128], index: 1, kind: input, shape index: {}]   ;;  %s305_s2 = inlined_call_operand.vmem [shape: f32[1,128], index: 2, kind: input, shape index: {}]   ;;  %s306_s3 = inlined_call_operand.hbm [shape: f32[16,128], index: 3, kind: output, shape index: {}]  }
   0x1   :  { %9 = vsyncpa [#allocation5], 0  ;;  %s16_s14 = sshll.u32 %s304_s1, 4  ;;  %s265_s15 = smov [#allocation3]   ;;  %s17_s14 = int_to_ptr.hbm [resolvable:$true] %s16_s14 }
   0x2   :  { %s18_s16 = sshll.u32 %s265_s15, 4  ;;  %s266_s17 = smov 64   ;;  %s19_s16 = int_to_ptr.vmem [resolvable:$true] %s18_s16 }
   0x3   :  { %s267_s18 = smov 4  }
   0x4   :  { %24 = dma.hbm_to_vmem [thread:$0]  %s17_s14, 1024, %s19_s16, [#allocation4], %s266_s17, %s266_s17, %s267_s18  }
   0x5   :  { %261 = dma.done.wait [#allocation4], 1024  }
   0x6   :  { %262 = vsyncadd [#allocation4], 4294966272  ;;  %v205_v0 = vld [vmem:[#allocation3 + $0x38] sm:$0xff]  ;;  %v204_v1 = vld [vmem:[#allocation3 + $0x30] sm:$0xff]  ;;  %s268_s22 = smov [#allocation6]   ;;  %s148_s26 = sshll.u32 %s306_s3, 4  ;;  %s149_s26 = int_to_ptr.hbm [resolvable:$true] %s148_s26 }
   0x7   :  { %111 = vmatpush.bf16.msra.mxu0 %v205_v0  ;;  %v203_v2 = vld [vmem:[#allocation3 + $0x28] sm:$0xff]  ;;  %v202_v3 = vld [vmem:[#allocation3 + $0x20] sm:$0xff]  ;;  %v201_v4 = vld [vmem:[#allocation3 + $0x18] sm:$0xff]  ;;  %s146_s23 = sshll.u32 %s268_s22, 4  ;;  %s270_s27 = smov 8   ;;  %s147_s23 = int_to_ptr.vmem [resolvable:$true] %s146_s23 }
   0x8   :  { %v200_v5 = vld [vmem:[#allocation3 + $0x10] sm:$0xff]  ;;  %v199_v6 = vld [vmem:[#allocation3 + $0x8] sm:$0xff]  ;;  %v198_v7 = vld [vmem:[#allocation3] sm:$0xff] }
   0x9   :  { %v197_v8 = vld [vmem:[%s303_s0] sm:$0xff]  ;;  %s269_s0 = smov 128  }
   0xa   :  { %v212_v9 = vld [vmem:[%s305_s2] ss:$0 sm:$0xff] }
   0xb   :  { %112 = vmatpush.bf16.msra.mxu0 %v204_v1 }
   0xf   :  { %113 = vmatpush.bf16.msra.mxu0 %v203_v2 }
  0x13   :  { %114 = vmatpush.bf16.msra.mxu0 %v202_v3 }
  0x17   :  { %115 = vmatpush.bf16.msra.mxu0 %v201_v4 }
  0x1b   :  { %116 = vmatpush.bf16.msra.mxu0 %v200_v5 }
  0x1f   :  { %117 = vmatpush.bf16.msra.mxu0 %v199_v6 }
  0x23   :  { %118 = vmatpush.bf16.msra.mxu0 %v198_v7 }
  0x26   :  { %119 = vmatmul.bf16.vlgmr.msra.gmra.mxu0 %v197_v8 }
  0xa3   :  { %v120_v10 = vpop.f32.mrf.mxu0 }
  0xa4   :  { %v138_v11 = vadd.f32 %v212_v9, %v120_v10 }
  0xa6   :  { %140 = vst [vmem:[#allocation6] sm:$0xff] %v138_v11 }
  0xab   :  { %v122_v12 = vpop.f32.mrf.mxu0 }
  0xac   :  { %v139_v13 = vadd.f32 %v212_v9, %v122_v12 }
  0xae   :  { %141 = vst [vmem:[#allocation6 + $0x8] sm:$0xff] %v139_v13 }
  0xaf   :  { %154 = dma.vmem_to_hbm [thread:$0]  %s147_s23, 256, %s149_s26, [#allocation5], %s269_s0, %s269_s0, %s270_s27  }
  0xb0   :  { %263 = dma.done.wait [#allocation5], 256  }
  0xb1   :  { %264 = vsyncadd [#allocation5], 4294967040 }
  0xb2   :  { %159 = vsyncpa [#allocation4], 1 }
  0xb3   :  { %160 = vsyncpa [#allocation5], 1 }

// kernel: causal_self_attention.3
= control target key start
LH: loop header
LB: loop body
LE: loop exit
PB: predicated region body
PF: predicated region fallthrough
CT: control target
= control target key end

     0   :  { %8 = vsyncpa [#allocation4], 0  ;;  %s541_s0 = inlined_call_operand.hbm [shape: f32[16,128], index: 0, kind: input, shape index: {}]   ;;  %s542_s1 = inlined_call_operand.hbm [shape: bf16[128,384], index: 1, kind: input, shape index: {}]   ;;  %s543_s2 = inlined_call_operand.vmem [shape: f32[1,384], index: 2, kind: input, shape index: {}]   ;;  %s544_s3 = inlined_call_operand.vmem [shape: bf16[16,384], index: 3, kind: output, shape index: {}]  }
   0x1   :  { %s14_s14 = sshll.u32 %s541_s0, 4  ;;  %s15_s14 = int_to_ptr.hbm [resolvable:$true] %s14_s14 }
   0x2   :  { %9 = vsyncpa [#allocation6], 0  ;;  %s494_s15 = smov [#allocation3]   ;;  %s27_s19 = sshll.u32 %s542_s1, 4  ;;  %s28_s19 = int_to_ptr.hbm [resolvable:$true] %s27_s19 }
   0x3   :  { %s16_s16 = sshll.u32 %s494_s15, 4  ;;  %s495_s20 = smov 128   ;;  %s17_s16 = int_to_ptr.vmem [resolvable:$true] %s16_s16 }
   0x4   :  { %s496_s21 = smov 8   ;;  %s497_s22 = smov [#allocation5]  }
   0x5   :  { %22 = dma.hbm_to_vmem [thread:$0]  %s15_s14, 256, %s17_s16, [#allocation4], %s495_s20, %s495_s20, %s496_s21  }
   0x6   :  { %s29_s23 = sshll.u32 %s497_s22, 4  ;;  %s498_s24 = smov 192   ;;  %s30_s23 = int_to_ptr.vmem [resolvable:$true] %s29_s23 }
   0x7   :  { %s499_s25 = smov 12  }
   0x8   :  { %35 = dma.hbm_to_vmem [thread:$0]  %s28_s19, 3072, %s30_s23, [#allocation6], %s498_s24, %s498_s24, %s499_s25  }
   0x9   :  { %490 = dma.done.wait [#allocation4], 256  }
   0xa   :  { %491 = vsyncadd [#allocation4], 4294967040 }
   0xb   :  { %492 = dma.done.wait [#allocation6], 3072  }
   0xc   :  { %493 = vsyncadd [#allocation6], 4294964224  ;;  %v402_v0 = vld [vmem:[#allocation5 + $0xa8] sm:$0xf]  ;;  %v434_v1 = vld [vmem:[#allocation5 + $0xb0] sm:$0xf0] }
   0xd   :  { %v433_v2 = vld [vmem:[#allocation5 + $0xac] sm:$0xf]  ;;  %v403_v3 = vor.u32 %v434_v1, %v402_v0  ;;  %v404_v4 = vld [vmem:[#allocation5 + $0xb4] sm:$0xf0]  ;;  %v410_v5 = vld [vmem:[#allocation5 + $0xb0] sm:$0xf] }
   0xe   :  { %v435_v6 = vld [vmem:[#allocation5 + $0xb8] sm:$0xf0]  ;;  %v407_v7 = vor.u32 %v433_v2, %v404_v4  ;;  %v390_v9 = vld [vmem:[#allocation5 + $0x90] sm:$0xf]  ;;  %v430_v11 = vld [vmem:[#allocation5 + $0x94] sm:$0xf] }
   0xf   :  { %v411_v8 = vor.u32 %v435_v6, %v410_v5  ;;  %v431_v10 = vld [vmem:[#allocation5 + $0x98] sm:$0xf0]  ;;  %225 = vmatpush.bf16.msra.mxu0 %v403_v3  ;;  %v392_v13 = vld [vmem:[#allocation5 + $0x9c] sm:$0xf0]  ;;  %v398_v14 = vld [vmem:[#allocation5 + $0x98] sm:$0xf] }
  0x10   :  { %v391_v12 = vor.u32 %v431_v10, %v390_v9  ;;  %v432_v15 = vld [vmem:[#allocation5 + $0xa0] sm:$0xf0]  ;;  %239 = vmatpush.bf16.msra.mxu1 %v407_v7  ;;  %v395_v16 = vor.u32 %v430_v11, %v392_v13  ;;  %v378_v18 = vld [vmem:[#allocation5 + $0x78] sm:$0xf]  ;;  %v427_v20 = vld [vmem:[#allocation5 + $0x7c] sm:$0xf] }
  0x11   :  { %253 = vmatpush.bf16.msra.mxu2 %v411_v8  ;;  %v399_v17 = vor.u32 %v432_v15, %v398_v14  ;;  %v428_v19 = vld [vmem:[#allocation5 + $0x80] sm:$0xf0]  ;;  %v380_v21 = vld [vmem:[#allocation5 + $0x84] sm:$0xf0]  ;;  %v386_v22 = vld [vmem:[#allocation5 + $0x80] sm:$0xf] }
  0x12   :  { %v429_v23 = vld [vmem:[#allocation5 + $0x88] sm:$0xf0]  ;;  %v379_v24 = vor.u32 %v428_v19, %v378_v18  ;;  %v383_v25 = vor.u32 %v427_v20, %v380_v21  ;;  %v366_v27 = vld [vmem:[#allocation5 + $0x60] sm:$0xf]  ;;  %v424_v29 = vld [vmem:[#allocation5 + $0x64] sm:$0xf] }
  0x13   :  { %226 = vmatpush.bf16.msra.mxu0 %v391_v12  ;;  %v387_v26 = vor.u32 %v429_v23, %v386_v22  ;;  %v425_v28 = vld [vmem:[#allocation5 + $0x68] sm:$0xf0]  ;;  %v368_v30 = vld [vmem:[#allocation5 + $0x6c] sm:$0xf0]  ;;  %v374_v31 = vld [vmem:[#allocation5 + $0x68] sm:$0xf] }
  0x14   :  { %240 = vmatpush.bf16.msra.mxu1 %v395_v16  ;;  %v426_v32 = vld [vmem:[#allocation5 + $0x70] sm:$0xf0]  ;;  %v367_v33 = vor.u32 %v425_v28, %v366_v27  ;;  %v371_v34 = vor.u32 %v424_v29, %v368_v30  ;;  %v354_v36 = vld [vmem:[#allocation5 + $0x48] sm:$0xf]  ;;  %v421_v38 = vld [vmem:[#allocation5 + $0x4c] sm:$0xf] }
  0x15   :  { %254 = vmatpush.bf16.msra.mxu2 %v399_v17  ;;  %v375_v35 = vor.u32 %v426_v32, %v374_v31  ;;  %v422_v37 = vld [vmem:[#allocation5 + $0x50] sm:$0xf0]  ;;  %v356_v39 = vld [vmem:[#allocation5 + $0x54] sm:$0xf0]  ;;  %v362_v40 = vld [vmem:[#allocation5 + $0x50] sm:$0xf] }
  0x16   :  { %v423_v41 = vld [vmem:[#allocation5 + $0x58] sm:$0xf0]  ;;  %v355_v42 = vor.u32 %v422_v37, %v354_v36  ;;  %v359_v43 = vor.u32 %v421_v38, %v356_v39  ;;  %v342_v45 = vld [vmem:[#allocation5 + $0x30] sm:$0xf]  ;;  %v418_v47 = vld [vmem:[#allocation5 + $0x34] sm:$0xf] }
  0x17   :  { %227 = vmatpush.bf16.msra.mxu0 %v379_v24  ;;  %v363_v44 = vor.u32 %v423_v41, %v362_v40  ;;  %v419_v46 = vld [vmem:[#allocation5 + $0x38] sm:$0xf0]  ;;  %v344_v48 = vld [vmem:[#allocation5 + $0x3c] sm:$0xf0]  ;;  %v350_v49 = vld [vmem:[#allocation5 + $0x38] sm:$0xf] }
  0x18   :  { %241 = vmatpush.bf16.msra.mxu1 %v383_v25  ;;  %v420_v50 = vld [vmem:[#allocation5 + $0x40] sm:$0xf0]  ;;  %v343_v51 = vor.u32 %v419_v46, %v342_v45  ;;  %v347_v52 = vor.u32 %v418_v47, %v344_v48  ;;  %v330_v54 = vld [vmem:[#allocation5 + $0x18] sm:$0xf]  ;;  %v415_v56 = vld [vmem:[#allocation5 + $0x1c] sm:$0xf] }
  0x19   :  { %255 = vmatpush.bf16.msra.mxu2 %v387_v26  ;;  %v351_v53 = vor.u32 %v420_v50, %v350_v49  ;;  %v416_v55 = vld [vmem:[#allocation5 + $0x20] sm:$0xf0]  ;;  %v332_v57 = vld [vmem:[#allocation5 + $0x24] sm:$0xf0]  ;;  %v338_v58 = vld [vmem:[#allocation5 + $0x20] sm:$0xf] }
  0x1a   :  { %v417_v59 = vld [vmem:[#allocation5 + $0x28] sm:$0xf0]  ;;  %v331_v60 = vor.u32 %v416_v55, %v330_v54  ;;  %v335_v61 = vor.u32 %v415_v56, %v332_v57  ;;  %v318_v63 = vld [vmem:[#allocation5] sm:$0xf]  ;;  %v412_v1 = vld [vmem:[#allocation5 + $0x4] sm:$0xf] }
  0x1b   :  { %228 = vmatpush.bf16.msra.mxu0 %v367_v33  ;;  %v339_v62 = vor.u32 %v417_v59, %v338_v58  ;;  %v413_v0 = vld [vmem:[#allocation5 + $0x8] sm:$0xf0]  ;;  %v320_v2 = vld [vmem:[#allocation5 + $0xc] sm:$0xf0]  ;;  %v326_v3 = vld [vmem:[#allocation5 + $0x8] sm:$0xf] }
  0x1c   :  { %242 = vmatpush.bf16.msra.mxu1 %v371_v34  ;;  %v414_v4 = vld [vmem:[#allocation5 + $0x10] sm:$0xf0]  ;;  %v319_v5 = vor.u32 %v413_v0, %v318_v63  ;;  %v63_v7 = vld [vmem:[#allocation3 + $0x8] sm:$0xff]  ;;  %v323_v8 = vor.u32 %v412_v1, %v320_v2  ;;  %v288_v11 = vld [vmem:[%s543_s2] sm:$0x7] }
  0x1d   :  { %256 = vmatpush.bf16.msra.mxu2 %v375_v35  ;;  %v62_v6 = vld [vmem:[#allocation3] sm:$0xff]  ;;  %v327_v9 = vor.u32 %v414_v4, %v326_v3  ;;  %v290_v12 = vperm.slane %v288_v11, 0  ;;  %v291_v13 = vperm.slane %v288_v11, 1  ;;  %v292_v19 = vperm.slane %v288_v11, 2 }
  0x1e   :  { %v64_v10 = vpack.c.bf16 %v63_v7, %v62_v6 }
  0x1f   :  { %229 = vmatpush.bf16.msra.mxu0 %v355_v42 }
  0x20   :  { %243 = vmatpush.bf16.msra.mxu1 %v359_v43 }
  0x21   :  { %257 = vmatpush.bf16.msra.mxu2 %v363_v44 }
  0x23   :  { %230 = vmatpush.bf16.msra.mxu0 %v343_v51 }
  0x24   :  { %244 = vmatpush.bf16.msra.mxu1 %v347_v52 }
  0x25   :  { %258 = vmatpush.bf16.msra.mxu2 %v351_v53 }
  0x27   :  { %231 = vmatpush.bf16.msra.mxu0 %v331_v60 }
  0x28   :  { %245 = vmatpush.bf16.msra.mxu1 %v335_v61 }
  0x29   :  { %259 = vmatpush.bf16.msra.mxu2 %v339_v62 }
  0x2b   :  { %232 = vmatpush.bf16.msra.mxu0 %v319_v5 }
  0x2c   :  { %246 = vmatpush.bf16.msra.mxu1 %v323_v8 }
  0x2d   :  { %260 = vmatpush.bf16.msra.mxu2 %v327_v9 }
  0x2e   :  { %233 = vmatmul.bf16.vlgmr.msra.gmra.mxu0 %v64_v10 }
  0x2f   :  { %247 = vmatmul.bf16.vlgmr.msra.gmra.mxu1 %v64_v10 }
  0x30   :  { %261 = vmatmul.bf16.vlgmr.msra.gmra.mxu2 %v64_v10 }
  0xab   :  { %v234_v14 = vpop.f32.mrf.mxu0 }
  0xac   :  { %v296_v15 = vadd.f32 %v290_v12, %v234_v14  ;;  %v248_v16 = vpop.f32.mrf.mxu1 }
  0xad   :  { %v297_v17 = vadd.f32 %v291_v13, %v248_v16 }
  0xaf   :  { %v302_v18 = vpack.c.bf16 %v297_v17, %v296_v15 }
  0xb1   :  { %306 = vst [vmem:[%s544_s3] sm:$0xff] %v302_v18 }
  0xb3   :  { %v262_v20 = vpop.f32.mrf.mxu2  ;;  %v236_v22 = vpop.f32.mrf.mxu0 }
  0xb4   :  { %v298_v21 = vadd.f32 %v292_v19, %v262_v20  ;;  %v299_v23 = vadd.f32 %v290_v12, %v236_v22  ;;  %v250_v24 = vpop.f32.mrf.mxu1 }
  0xb5   :  { %v300_v26 = vadd.f32 %v291_v13, %v250_v24 }
  0xb6   :  { %v303_v25 = vpack.c.bf16 %v298_v21, %v298_v21 }
  0xb7   :  { %v304_v27 = vpack.c.bf16 %v300_v26, %v299_v23 }
  0xb8   :  { %307 = vst [vmem:[%s544_s3 + $0x8] sm:$0xf] %v303_v25 }
  0xb9   :  { %308 = vst [vmem:[%s544_s3 + $0xc] sm:$0xff] %v304_v27 }
  0xbb   :  { %v264_v28 = vpop.f32.mrf.mxu2 }
  0xbc   :  { %v301_v29 = vadd.f32 %v292_v19, %v264_v28 }
  0xbe   :  { %v305_v30 = vpack.c.bf16 %v301_v29, %v301_v29 }
  0xc0   :  { %309 = vst [vmem:[%s544_s3 + $0x14] sm:$0xf] %v305_v30 }
  0xc1   :  { %314 = vsyncpa [#allocation4], 1 }
  0xc2   :  { %315 = vsyncpa [#allocation6], 1 }

// kernel: causal_self_attention.4
= control target key start
LH: loop header
LB: loop body
LE: loop exit
PB: predicated region body
PF: predicated region fallthrough
CT: control target
= control target key end

     0   :  { %s2433_s12 = smov 0   ;;  %s2435_s13 = smov 0   ;;  %s2904_s0 = inlined_call_operand.vmem [shape: bf16[2,8,384], index: 0, kind: input, shape index: {}, may-alias: {0,1,2}]   ;;  %s2905_s1 = inlined_call_operand.vmem [shape: bf16[2,8,384], index: 1, kind: input, shape index: {}, may-alias: {0,1,2}]   ;;  %s2906_s2 = inlined_call_operand.vmem [shape: bf16[2,8,384], index: 2, kind: input, shape index: {}, may-alias: {0,1,2}]   ;;  %s2907_s3 = inlined_call_operand.vmem [shape: bf16[2,8,128], index: 3, kind: output, shape index: {}]  }
   0x1   :  { %s2437_s14 = smov 0  }
   0x2 LB: > { %s32_s15 = sadd.s32 1, %s2399_s13  ;;  %p2236_p0 = scmp.ge.s32.totalorder %s2403_s14, 1  ;;  %s2403_s14 = sphi %s2437_s14, %s13_s14   ;;  %s2399_s13 = sphi %s2435_s13, %s2909_s13   ;;  %s2395_s12 = sphi %s2433_s12, %s2908_s12  }
   0x3   : > { %p34_p1 = scmp.ge.s32.totalorder %s32_s15, 2  ;;  %p198_p2 = scmp.lt.s32.totalorder %s2403_s14, 3 }
   0x5   : > { %s2911_s15 = smov (%p34_p1, %s32_s15), 0  ;;  %p199_p3 = pnand %p2236_p0, %p198_p2 }
   0x6   : > { %p248_p4 = scmp.lt.s32.totalorder (!%p199_p3), %s2395_s12, 1  ;;  %s2405_s23 = smov (!%p199_p3), 96  }
   0x7   : > { %202 = sbr.rel (%p199_p3) target bundleno = 1543 (0x607), region = 32  ;;  %s2406_s24 = smov (!%p199_p3), 32  }
   0x8   : > { %s2407_s25 = smov (!%p199_p3), 64  }
   0xc   : > { %s2913_s12 = smov (!%p248_p4, %s2395_s12), 1  ;;  %v2408_v5 = vmov 1983009808   ;;  %v2409_v17 = vmov 1934713408   ;;  %vm352_vm0 = vcmask 1047556  }
   0xd   : > { %s2454_s16 = smul.u32 12, %s2913_s12  ;;  %v343_v6 = vunpack.c.l.s4 %v2408_v5  ;;  %v357_v18 = vunpack.c.l.s4 %v2409_v17  ;;  %vm298_vm1 = vcmask 261120   ;;  %vm1670_vm3 = vcmask 64512   ;;  %s2240_s29 = sshll.u32 %s2913_s12, 2 }
   0xe   : > { %vm289_vm4 = vcmask 7168   ;;  %vm1845_vm5 = vcmask 1043456   ;;  %vm2095_vm6 = vcmask 523264   ;;  %vm2097_vm7 = vcmask 785408   ;;  %s283_s5 = scalar_lea.vmem %s2907_s3, %s2240_s29 }
   0xf   : > { %s2172_s19 = scalar_lea.vmem %s2905_s1, %s2454_s16  ;;  %s256_s22 = scalar_lea.vmem %s2904_s0, %s2454_s16  ;;  %v2471_v10 = vunpack.c.0.s8 %v343_v6  ;;  %v2476_v25 = vunpack.c.0.s8 %v357_v18 }
  0x10   : > { %v2241_v0 = vld [vmem:[%s2172_s19 + $0x4] sm:$0xf]  ;;  %v310_v1 = vld [vmem:[%s256_s22] sm:$0xf]  ;;  %s2178_s28 = scalar_lea.vmem %s2906_s2, %s2454_s16 }
  0x11   : > { %323 = vrot.lane.b32.xlu0 %v2241_v0, %s2405_s23  ;;  %327 = vrot.lane.b32.xlu1 %v2241_v0, %s2406_s24  ;;  %v311_v2 = vunpack.c.l.bf16 %v310_v1  ;;  %v332_v8 = vshrl.u32 %v2241_v0, 16 }
  0x13   : > { %v312_v3 = vmul.f32 0.17675781, %v311_v2 }
  0x15   : > { %v2467_v4 = vpack.c.bf16 %v312_v3, %v312_v3 }
  0x19   : > { %325 = vrot.lane.b32.xlu0 %v2241_v0, %s2407_s25 }
  0x21   : > { %317 = vrot.lane.b32.xlu0 %v2467_v4, %s2407_s25 }
  0x83   : > { %v324_v7 = vpop.permute.xlu0 %323  ;;  %v328_v12 = vpop.permute.xlu1 %327 }
  0x84   : > { %v333_v9 = vshrl.u32 %v324_v7, 16  ;;  %v331_v11 = vpack.i.b16 %v324_v7, %v2241_v0  ;;  %v339_v15 = vshrl.u32 %v328_v12, 16 }
  0x86   : > { %v334_v13 = vpack.i.b16 %v333_v9, %v332_v8  ;;  %v345_v14 = vperm.slane %v331_v11, %v2471_v10 }
  0x88   : > { %v372_v19 = vperm.slane %v334_v13, %v2471_v10  ;;  %v354_v22 = vrot.slane %v345_v14, 4 }
  0x8a   : > { %v380_v26 = vrot.slane %v372_v19, 4 }
  0x8b   : > { %v326_v16 = vpop.permute.xlu0 %325 }
  0x8c   : > { %v337_v20 = vpack.i.b16 %v328_v12, %v326_v16  ;;  %v338_v21 = vshrl.u32 %v326_v16, 16 }
  0x8e   : > { %v340_v23 = vpack.i.b16 %v339_v15, %v338_v21  ;;  %v350_v24 = vperm.slane %v337_v20, %v2471_v10 }
  0x90   : > { %v351_v27 = vrot.slane %v350_v24, 4  ;;  %v377_v28 = vperm.slane %v340_v23, %v2471_v10  ;;  %v355_v29 = vsel %vm352_vm0, %v350_v24, %v354_v22 }
  0x91   : > { %v363_v33 = vperm.slane %v355_v29, %v2476_v25 }
  0x92   : > { %v381_v30 = vsel %vm352_vm0, %v377_v28, %v380_v26  ;;  %v353_v31 = vsel %vm352_vm0, %v351_v27, %v345_v14  ;;  %v378_v32 = vrot.slane %v377_v28, 4 }
  0x93   : > { %v389_v34 = vperm.slane %v381_v30, %v2476_v25  ;;  %v359_v35 = vperm.slane %v353_v31, %v2476_v25  ;;  %v366_v42 = vrot.slane %v363_v33, 4  ;;  %v2495_v50 = vpop.permute.xlu0 %317 }
  0x94   : > { %v379_v36 = vsel %vm352_vm0, %v378_v32, %v372_v19 }
  0x95   : > { %2286 = vxpose.binary.xlu1.c.b16.start.end [1/2] (short) (narrow) %v389_v34, %v363_v33, 32  ;;  %v364_v37 = vrot.slane %v359_v35, 4  ;;  %v385_v38 = vperm.slane %v379_v36, %v2476_v25  ;;  %v392_v43 = vrot.slane %v389_v34, 4  ;;  %v367_v44 = vsel %vm352_vm0, 0, %v366_v42 }
  0x97   : > { %2291 = vxpose.binary.xlu2.c.b16.start.end [1/2] (short) (narrow) %v385_v38, %v359_v35, 32  ;;  %v390_v39 = vrot.slane %v385_v38, 4  ;;  %v365_v40 = vsel %vm352_vm0, 0, %v364_v37  ;;  %v393_v45 = vsel %vm352_vm0, 0, %v392_v43 }
  0x99   : > { %v391_v41 = vsel %vm352_vm0, 0, %v390_v39 }
  0x9a   : > { %2301 = vxpose.binary.xlu0.c.b16.start.end [1/2] (short) (narrow) %v391_v41, %v365_v40, 32 }
  0xb7   : > { %2296 = vxpose.binary.xlu2.c.b16.start.end [1/2] (short) (narrow) %v393_v45, %v367_v44, 32 }
 0x130   : > { %319 = vrot.lane.b32.xlu2 %v2467_v4, %s2406_s24 }
 0x138   : > { %v2292_v46 = vpop.trf.xlu2  ;;  %315 = vrot.lane.b32.xlu2 %v2467_v4, %s2405_s23 }
 0x139   : > { %v598_v62 = vshrl.u32 %v2292_v46, 16 }
 0x140   : > { %v2293_v47 = vpop.trf.xlu2 }
 0x141   : > { %v2287_v48 = vpop.trf.xlu1  ;;  %v599_v60 = vshrl.u32 %v2293_v47, 16  ;;  %v596_v1 = vpack.i.b16 %v2293_v47, %v2292_v46 }
 0x142   : > { %v614_v54 = vshrl.u32 %v2287_v48, 16 }
 0x143   : > { %v600_v2 = vpack.i.b16 %v599_v60, %v598_v62  ;;  %v660_v42 = vrot.slane %v596_v1, 4 }
 0x145   : > { %v716_v43 = vrot.slane %v600_v2, 4 }
 0x146   : > { %v2302_v53 = vpop.trf.xlu0 }
 0x147   : > { %v606_v6 = vshrl.u32 %v2302_v53, 16 }
 0x148   : > { %v2294_v49 = vpop.trf.xlu2 }
 0x149   : > { %v2288_v51 = vpop.trf.xlu1  ;;  %v630_v40 = vshrl.u32 %v2294_v49, 16 }
 0x14a   : > { %v615_v55 = vshrl.u32 %v2288_v51, 16  ;;  %v612_v56 = vpack.i.b16 %v2288_v51, %v2287_v48 }
 0x14c   : > { %v616_v58 = vpack.i.b16 %v615_v55, %v614_v54  ;;  %v658_v61 = vrot.slane %v612_v56, 4  ;;  %v661_v47 = vsel %vm352_vm0, %v612_v56, %v660_v42 }
 0x14e   : > { %v714_v63 = vrot.slane %v616_v58, 4  ;;  %v2303_v0 = vpop.trf.xlu0  ;;  %v659_v3 = vsel %vm352_vm0, %v658_v61, %v596_v1  ;;  %v717_v48 = vsel %vm352_vm0, %v616_v58, %v716_v43 }
 0x14f   : > { %v607_v11 = vshrl.u32 %v2303_v0, 16  ;;  %v2502_v14 = vperm.slane %v659_v3, %v2471_v10  ;;  %v2504_v15 = vpack.i.b16 %v2303_v0, %v2302_v53 }
 0x150   : > { %v2295_v52 = vpop.trf.xlu2  ;;  %v715_v5 = vsel %vm352_vm0, %v714_v63, %v600_v2 }
 0x151   : > { %v2289_v57 = vpop.trf.xlu1  ;;  %v2510_v18 = vperm.slane %v715_v5, %v2471_v10  ;;  %v2512_v22 = vpack.i.b16 %v607_v11, %v606_v6  ;;  %v684_v27 = vrot.slane %v2502_v14, 4  ;;  %v631_v35 = vshrl.u32 %v2295_v52, 16 }
 0x152   : > { %v646_v19 = vshrl.u32 %v2289_v57, 16  ;;  %v628_v44 = vpack.i.b16 %v2295_v52, %v2294_v49  ;;  %v2538_v49 = vperm.slane %v661_v47, %v2471_v10  ;;  %v2541_v52 = vperm.slane %v717_v48, %v2471_v10 }
 0x153   : > { %v740_v34 = vrot.slane %v2510_v18, 4  ;;  %v632_v45 = vpack.i.b16 %v631_v35, %v630_v40  ;;  %v672_v5 = vrot.slane %v2504_v15, 4 }
 0x154   : > { %v772_v2 = vrot.slane %v628_v44, 4  ;;  %v696_v47 = vrot.slane %v2538_v49, 4 }
 0x155   : > { %v828_v3 = vrot.slane %v632_v45, 4 }
 0x156   : > { %v2304_v21 = vpop.trf.xlu0 }
 0x158   : > { %v2297_v59 = vpop.trf.xlu2 }
 0x159   : > { %v622_v8 = vshrl.u32 %v2297_v59, 16  ;;  %v2290_v9 = vpop.trf.xlu1 }
 0x15a   : > { %v647_v20 = vshrl.u32 %v2290_v9, 16  ;;  %v644_v28 = vpack.i.b16 %v2290_v9, %v2289_v57  ;;  %v638_v57 = vshrl.u32 %v2304_v21, 16 }
 0x15c   : > { %v648_v30 = vpack.i.b16 %v647_v20, %v646_v19  ;;  %v770_v37 = vrot.slane %v644_v28, 4 }
 0x15e   : > { %v826_v41 = vrot.slane %v648_v30, 4  ;;  %v2305_v46 = vpop.trf.xlu0  ;;  %v771_v51 = vsel %vm352_vm0, %v770_v37, %v628_v44  ;;  %v829_v19 = vsel %vm352_vm0, %v648_v30, %v828_v3 }
 0x15f   : > { %v777_v56 = vperm.slane %v771_v51, %v2471_v10  ;;  %v636_v62 = vpack.i.b16 %v2305_v46, %v2304_v21  ;;  %v837_v51 = vperm.slane %v829_v19, %v2471_v10 }
 0x160   : > { %v2298_v7 = vpop.trf.xlu2  ;;  %v827_v54 = vsel %vm352_vm0, %v826_v41, %v632_v45 }
 0x161   : > { %v2499_v12 = vpack.i.b16 %v2298_v7, %v2297_v59  ;;  %v623_v13 = vshrl.u32 %v2298_v7, 16  ;;  %v639_v59 = vshrl.u32 %v2305_v46, 16  ;;  %v833_v58 = vperm.slane %v827_v54, %v2471_v10 }
 0x162   : > { %v728_v7 = vrot.slane %v2512_v22, 4  ;;  %v784_v21 = vrot.slane %v636_v62, 4 }
 0x163   : > { %v2506_v16 = vpack.i.b16 %v623_v13, %v622_v8  ;;  %v670_v17 = vrot.slane %v2499_v12, 4  ;;  %v640_v8 = vpack.i.b16 %v639_v59, %v638_v57  ;;  %v773_v13 = vsel %vm352_vm0, %v644_v28, %v772_v2 }
 0x164   : > { %v781_v48 = vperm.slane %v773_v13, %v2471_v10  ;;  %v752_v57 = vrot.slane %v2541_v52, 4 }
 0x165   : > { %v671_v23 = vsel %vm352_vm0, %v670_v17, %v2504_v15  ;;  %v726_v24 = vrot.slane %v2506_v16, 4  ;;  %v796_v17 = vrot.slane %v777_v56, 4  ;;  %v729_v30 = vsel %vm352_vm0, %v2506_v16, %v728_v7 }
 0x166   : > { %v677_v26 = vperm.slane %v671_v23, %v2471_v10  ;;  %v737_v40 = vperm.slane %v729_v30, %v2471_v10 }
 0x167   : > { %v727_v29 = vsel %vm352_vm0, %v726_v24, %v2512_v22  ;;  %v852_v24 = vrot.slane %v833_v58, 4 }
 0x168   : > { %v2299_v31 = vpop.trf.xlu2  ;;  %v685_v32 = vsel %vm352_vm0, %v677_v26, %v684_v27  ;;  %v733_v33 = vperm.slane %v727_v29, %v2471_v10  ;;  %v682_v1 = vrot.slane %v677_v26, 4  ;;  %v673_v29 = vsel %vm352_vm0, %v2499_v12, %v672_v5 }
 0x169   : > { %v2526_v38 = vperm.slane %v685_v32, %v2476_v25  ;;  %v654_v53 = vshrl.u32 %v2299_v31, 16  ;;  %v681_v37 = vperm.slane %v673_v29, %v2471_v10  ;;  %v750_v2 = vrot.slane %v737_v40, 4 }
 0x16a   : > { %v741_v36 = vsel %vm352_vm0, %v733_v33, %v740_v34  ;;  %v738_v6 = vrot.slane %v733_v33, 4  ;;  %v683_v15 = vsel %vm352_vm0, %v682_v1, %v2502_v14  ;;  %v864_v1 = vrot.slane %v837_v51, 4 }
 0x16b   : > { %v2529_v39 = vperm.slane %v741_v36, %v2476_v25  ;;  %v2566_v14 = vperm.slane %v683_v15, %v2476_v25 }
 0x16c   : > { %v739_v26 = vsel %vm352_vm0, %v738_v6, %v2510_v18 }
 0x16d   : > { %2306 = vxpose.binary.xlu1.c.b16.start.end [1/2] (short) (narrow) %v2529_v39, %v2526_v38, 16  ;;  %v2571_v35 = vperm.slane %v739_v26, %v2476_v25  ;;  %v706_v30 = vrot.slane %v2566_v14, 4 }
 0x170   : > { %v2300_v55 = vpop.trf.xlu2 }
 0x171   : > { %v652_v60 = vpack.i.b16 %v2300_v55, %v2299_v31  ;;  %v655_v61 = vshrl.u32 %v2300_v55, 16  ;;  %v840_v31 = vrot.slane %v640_v8, 4 }
 0x173   : > { %v656_v63 = vpack.i.b16 %v655_v61, %v654_v53  ;;  %v782_v0 = vrot.slane %v652_v60, 4  ;;  %v785_v41 = vsel %vm352_vm0, %v652_v60, %v784_v21 }
 0x174   : > { %v793_v59 = vperm.slane %v785_v41, %v2471_v10 }
 0x175   : > { %v783_v9 = vsel %vm352_vm0, %v782_v0, %v636_v62  ;;  %v838_v11 = vrot.slane %v656_v63, 4  ;;  %v841_v43 = vsel %vm352_vm0, %v656_v63, %v840_v31  ;;  %v697_v62 = vsel %vm352_vm0, %v681_v37, %v696_v47 }
 0x176   : > { %v789_v20 = vperm.slane %v783_v9, %v2471_v10  ;;  %v849_v60 = vperm.slane %v841_v43, %v2471_v10  ;;  %v808_v63 = vrot.slane %v781_v48, 4  ;;  %v694_v0 = vrot.slane %v681_v37, 4 }
 0x177   : > { %v839_v23 = vsel %vm352_vm0, %v838_v11, %v640_v8  ;;  %v705_v3 = vperm.slane %v697_v62, %v2476_v25  ;;  %v751_v9 = vsel %vm352_vm0, %v750_v2, %v2541_v52  ;;  %v762_v31 = vrot.slane %v2571_v35, 4 }
 0x178   : > { %v845_v22 = vperm.slane %v839_v23, %v2471_v10  ;;  %v797_v27 = vsel %vm352_vm0, %v789_v20, %v796_v17  ;;  %v794_v28 = vrot.slane %v789_v20, 4  ;;  %v809_v6 = vsel %vm352_vm0, %v793_v59, %v808_v63 }
 0x179   : > { %v2563_v32 = vperm.slane %v797_v27, %v2476_v25  ;;  %v865_v7 = vsel %vm352_vm0, %v849_v60, %v864_v1  ;;  %v695_v8 = vsel %vm352_vm0, %v694_v0, %v2538_v49  ;;  %v817_v11 = vperm.slane %v809_v6, %v2476_v25 }
 0x17a   : > { %v853_v33 = vsel %vm352_vm0, %v845_v22, %v852_v24  ;;  %v795_v18 = vsel %vm352_vm0, %v794_v28, %v777_v56  ;;  %v850_v34 = vrot.slane %v845_v22, 4  ;;  %v873_v13 = vperm.slane %v865_v7, %v2476_v25 }
 0x17b   : > { %v820_v12 = vrot.slane %v2563_v32, 4  ;;  %v2575_v36 = vperm.slane %v853_v33, %v2476_v25  ;;  %v2578_v16 = vperm.slane %v795_v18, %v2476_v25  ;;  %v712_v17 = vrot.slane %v705_v3, 4 }
 0x17c   : > { %v851_v42 = vsel %vm352_vm0, %v850_v34, %v833_v58  ;;  %v753_v58 = vsel %vm352_vm0, %v737_v40, %v752_v57  ;;  %v701_v20 = vperm.slane %v695_v8, %v2476_v25  ;;  %v757_v21 = vperm.slane %v751_v9, %v2476_v25 }
 0x17d   : > { %2309 = vxpose.binary.xlu1.c.b16.start.end [1/2] (short) (narrow) %v2571_v35, %v2566_v14, 16  ;;  %v876_v44 = vrot.slane %v2575_v36, 4  ;;  %v818_v45 = vrot.slane %v2578_v16, 4  ;;  %v2590_v46 = vperm.slane %v851_v42, %v2476_v25  ;;  %v821_v53 = vsel %vm352_vm0, 0, %v820_v12 }
 0x17e   : > { %v761_v5 = vperm.slane %v753_v58, %v2476_v25  ;;  %v824_v23 = vrot.slane %v817_v11, 4  ;;  %v880_v15 = vrot.slane %v873_v13, 4  ;;  %v713_v24 = vsel %vm352_vm0, 0, %v712_v17 }
 0x17f   : > { %v877_v54 = vsel %vm352_vm0, 0, %v876_v44  ;;  %v874_v55 = vrot.slane %v2590_v46, 4  ;;  %v819_v61 = vsel %vm352_vm0, 0, %v818_v45  ;;  %v710_v49 = vrot.slane %v701_v20, 4 }
 0x180   : > { %2342 = vxpose.binary.xlu2.c.b16.start.end [1/2] (short) (narrow) %v877_v54, %v821_v53, 16  ;;  %v768_v19 = vrot.slane %v761_v5, 4  ;;  %v766_v26 = vrot.slane %v757_v21, 4  ;;  %v825_v52 = vsel %vm352_vm0, 0, %v824_v23  ;;  %v881_v27 = vsel %vm352_vm0, 0, %v880_v15 }
 0x181   : > { %v875_v56 = vsel %vm352_vm0, 0, %v874_v55  ;;  %v711_v28 = vsel %vm352_vm0, 0, %v710_v49  ;;  %v708_v33 = vrot.slane %v2526_v38, 4  ;;  %v764_v18 = vrot.slane %v2529_v39, 4 }
 0x182   : > { %2330 = vxpose.binary.xlu0.c.b16.start.end [1/2] (short) (narrow) %v875_v56, %v819_v61, 16  ;;  %v769_v22 = vsel %vm352_vm0, 0, %v768_v19  ;;  %v767_v29 = vsel %vm352_vm0, 0, %v766_v26  ;;  %v707_v34 = vsel %vm352_vm0, 0, %v706_v30  ;;  %v763_v12 = vsel %vm352_vm0, 0, %v762_v31 }
 0x183   : > { %v709_v37 = vsel %vm352_vm0, 0, %v708_v33  ;;  %v765_v40 = vsel %vm352_vm0, 0, %v764_v18  ;;  %v806_v41 = vrot.slane %v793_v59, 4  ;;  %v862_v42 = vrot.slane %v849_v60, 4 }
 0x185   : > { %v807_v14 = vsel %vm352_vm0, %v806_v41, %v781_v48  ;;  %v863_v35 = vsel %vm352_vm0, %v862_v42, %v837_v51 }
 0x186   : > { %v813_v38 = vperm.slane %v807_v14, %v2476_v25  ;;  %v869_v39 = vperm.slane %v863_v35, %v2476_v25 }
 0x188   : > { %v822_v43 = vrot.slane %v813_v38, 4  ;;  %v878_v44 = vrot.slane %v869_v39, 4 }
 0x18a   : > { %v823_v45 = vsel %vm352_vm0, 0, %v822_v43  ;;  %v879_v47 = vsel %vm352_vm0, 0, %v878_v44  ;;  %v2641_v48 = vpop.permute.xlu2 %319 }
 0x18d   : > { %2312 = vxpose.binary.xlu1.c.b16.start.end [1/2] (short) (narrow) %v769_v22, %v713_v24, 16 }
 0x190   : > { %2345 = vxpose.binary.xlu2.c.b16.start.end [1/2] (short) (narrow) %v881_v27, %v825_v52, 16 }
 0x192   : > { %2333 = vxpose.binary.xlu0.c.b16.start.end [1/2] (short) (narrow) %v767_v29, %v711_v28, 16  ;;  %v2643_v51 = vpop.permute.xlu2 %315 }
 0x19d   : > { %2315 = vxpose.binary.xlu1.c.b16.start.end [1/2] (short) (narrow) %v763_v12, %v707_v34, 16 }
 0x1a0   : > { %2348 = vxpose.binary.xlu2.c.b16.start.end [1/2] (short) (narrow) %v765_v40, %v709_v37, 16 }
 0x1ad   : > { %2318 = vxpose.binary.xlu1.c.b16.start.end [1/2] (short) (narrow) %v2575_v36, %v2563_v32, 16 }
 0x1b0   : > { %2351 = vxpose.binary.xlu2.c.b16.start.end [1/2] (short) (narrow) %v879_v47, %v823_v45, 16 }
 0x1bd   : > { %2321 = vxpose.binary.xlu1.c.b16.start.end [1/2] (short) (narrow) %v873_v13, %v817_v11, 16 }
 0x1cd   : > { %2324 = vxpose.binary.xlu1.c.b16.start.end [1/2] (short) (narrow) %v2590_v46, %v2578_v16, 16 }
 0x1dd   : > { %2327 = vxpose.binary.xlu1.c.b16.start.end [1/2] (short) (narrow) %v869_v39, %v813_v38, 16 }
 0x1ed   : > { %2336 = vxpose.binary.xlu1.c.b16.start.end [1/2] (short) (narrow) %v761_v5, %v705_v3, 16 }
 0x1fd   : > { %2339 = vxpose.binary.xlu1.c.b16.start.end [1/2] (short) (narrow) %v757_v21, %v701_v20, 16 }
 0x219   : > { %v2307_v53 = vpop.trf.xlu1 }
 0x21a   : > { %v1394_v32 = vrot.slane %v2307_v53, 4 }
 0x221   : > { %v2308_v54 = vpop.trf.xlu1  ;;  %v2343_v55 = vpop.trf.xlu2 }
 0x222   : > { %v1434_v60 = vrot.slane %v2308_v54, 4  ;;  %v1480_v27 = vrot.slane %v2343_v55, 4 }
 0x229   : > { %v2310_v36 = vpop.trf.xlu1  ;;  %v2344_v57 = vpop.trf.xlu2 }
 0x22a   : > { %v1395_v59 = vsel %vm352_vm0, %v1394_v32, %v2310_v36  ;;  %v1520_v30 = vrot.slane %v2344_v57, 4 }
 0x22b   : > { %v1399_v6 = vperm.slane %v1395_v59, %v2471_v10 }
 0x22e   : > { %v2331_v26 = vpop.trf.xlu0 }
 0x22f   : > { %v1481_v31 = vsel %vm352_vm0, %v1480_v27, %v2331_v26 }
 0x230   : > { %v1485_v41 = vperm.slane %v1481_v31, %v2471_v10 }
 0x231   : > { %v2311_v61 = vpop.trf.xlu1  ;;  %v2346_v56 = vpop.trf.xlu2 }
 0x232   : > { %v1435_v16 = vsel %vm352_vm0, %v1434_v60, %v2311_v61  ;;  %v1492_v28 = vrot.slane %v2346_v56, 4  ;;  %v1498_v53 = vrot.slane %v1485_v41, 4 }
 0x233   : > { %v1439_v19 = vperm.slane %v1435_v16, %v2471_v10 }
 0x236   : > { %v2332_v34 = vpop.trf.xlu0 }
 0x237   : > { %v1521_v12 = vsel %vm352_vm0, %v1520_v30, %v2332_v34 }
 0x238   : > { %v1525_v39 = vperm.slane %v1521_v12, %v2471_v10 }
 0x239   : > { %v2647_v46 = vpop.trf.xlu1  ;;  %v2347_v62 = vpop.trf.xlu2 }
 0x23a   : > { %v1532_v14 = vrot.slane %v2347_v62, 4  ;;  %v1538_v57 = vrot.slane %v1525_v39, 4 }
 0x23e   : > { %v2334_v31 = vpop.trf.xlu0 }
 0x241   : > { %v2649_v58 = vpop.trf.xlu1  ;;  %v2349_v63 = vpop.trf.xlu2 }
 0x242   : > { %v1400_v0 = vrot.slane %v2349_v63, 4 }
 0x249   : > { %v2316_v1 = vpop.trf.xlu1  ;;  %v2350_v5 = vpop.trf.xlu2 }
 0x24a   : > { %v1401_v2 = vsel %vm352_vm0, %v1400_v0, %v2316_v1  ;;  %v1440_v8 = vrot.slane %v2350_v5, 4 }
 0x24b   : > { %v1405_v3 = vperm.slane %v1401_v2, %v2471_v10 }
 0x24d   : > { %v1418_v7 = vrot.slane %v1405_v3, 4 }
 0x24f   : > { %v2655_v9 = vsel %vm352_vm0, %v1418_v7, %v1399_v6 }
 0x251   : > { %v2317_v11 = vpop.trf.xlu1  ;;  %v2352_v52 = vpop.trf.xlu2 }
 0x252   : > { %v1441_v13 = vsel %vm352_vm0, %v1440_v8, %v2317_v11  ;;  %v1493_v18 = vsel %vm352_vm0, %v1492_v28, %v2352_v52 }
 0x253   : > { %v1445_v17 = vperm.slane %v1441_v13, %v2471_v10  ;;  %v1497_v42 = vperm.slane %v1493_v18, %v2471_v10  ;;  %v1412_v18 = vrot.slane %v2647_v46, 4 }
 0x255   : > { %v1458_v20 = vrot.slane %v1445_v17, 4  ;;  %v1504_v55 = vrot.slane %v1497_v42, 4  ;;  %v1413_v34 = vsel %vm352_vm0, %v1412_v18, %v2334_v31  ;;  %v1452_v42 = vrot.slane %v2649_v58, 4 }
 0x256   : > { %v1417_v12 = vperm.slane %v1413_v34, %v2471_v10  ;;  %v2411_v31 = vmov 0  }
 0x257   : > { %v2661_v21 = vsel %vm352_vm0, %v1458_v20, %v1439_v19  ;;  %2354 = vset.pattern.permute.xlu1 %v2411_v31  ;;  %2355 = vset.pattern.permute.xlu2 %v2411_v31 }
 0x258   : > { %2356 = vset.pattern.permute.xlu0 %v2411_v31 }
 0x259   : > { %v2319_v23 = vpop.trf.xlu1  ;;  %v2353_v45 = vpop.trf.xlu2 }
 0x25a   : > { %v1474_v33 = vrot.slane %v2319_v23, 4  ;;  %v1533_v36 = vsel %vm352_vm0, %v1532_v14, %v2353_v45  ;;  %v1423_v14 = vperm.slane %v2655_v9, %v2476_v25  ;;  %v1463_v9 = vperm.slane %v2661_v21, %v2476_v25 }
 0x25b   : > { %v1537_v56 = vperm.slane %v1533_v36, %v2471_v10 }
 0x25c   : > { %v1432_v45 = vrot.slane %v1423_v14, 4 }
 0x25d   : > { %v1544_v3 = vrot.slane %v1537_v56, 4  ;;  %v1472_v56 = vrot.slane %v1463_v9, 4 }
 0x261   : > { %v2320_v15 = vpop.trf.xlu1 }
 0x262   : > { %v1514_v37 = vrot.slane %v2320_v15, 4 }
 0x269   : > { %v2322_v24 = vpop.trf.xlu1 }
 0x26a   : > { %v1486_v35 = vrot.slane %v2322_v24, 4 }
 0x271   : > { %v2323_v22 = vpop.trf.xlu1 }
 0x272   : > { %v1526_v16 = vrot.slane %v2323_v22, 4 }
 0x279   : > { %v2325_v49 = vpop.trf.xlu1 }
 0x27a   : > { %v1475_v40 = vsel %vm352_vm0, %v1474_v33, %v2325_v49 }
 0x27b   : > { %v1479_v43 = vperm.slane %v1475_v40, %v2471_v10  ;;  %v2335_v40 = vpop.trf.xlu0 }
 0x27d   : > { %v1499_v59 = vsel %vm352_vm0, %v1498_v53, %v1479_v43  ;;  %v1453_v43 = vsel %vm352_vm0, %v1452_v42, %v2335_v40 }
 0x27e   : > { %v1503_v62 = vperm.slane %v1499_v59, %v2476_v25 }
 0x280   : > { %v1512_v6 = vrot.slane %v1503_v62, 4 }
 0x281   : > { %v2326_v29 = vpop.trf.xlu1 }
 0x282   : > { %v1515_v38 = vsel %vm352_vm0, %v1514_v37, %v2326_v29 }
 0x283   : > { %v1519_v54 = vperm.slane %v1515_v38, %v2471_v10  ;;  %v1424_v38 = vrot.slane %v1417_v12, 4 }
 0x285   : > { %v1539_v61 = vsel %vm352_vm0, %v1538_v57, %v1519_v54 }
 0x286   : > { %v1543_v2 = vperm.slane %v1539_v61, %v2476_v25 }
 0x288   : > { %v1552_v17 = vrot.slane %v1543_v2, 4 }
 0x289   : > { %v2328_v44 = vpop.trf.xlu1 }
 0x28a   : > { %v1487_v47 = vsel %vm352_vm0, %v1486_v35, %v2328_v44 }
 0x28b   : > { %v1491_v32 = vperm.slane %v1487_v47, %v2471_v10  ;;  %v1457_v47 = vperm.slane %v1453_v43, %v2471_v10 }
 0x28d   : > { %v1505_v60 = vsel %vm352_vm0, %v1504_v55, %v1491_v32  ;;  %v1464_v57 = vrot.slane %v1457_v47, 4 }
 0x28e   : > { %v1509_v63 = vperm.slane %v1505_v60, %v2476_v25 }
 0x290   : > { %v1510_v7 = vrot.slane %v1509_v63, 4  ;;  %v1513_v11 = vsel %vm352_vm0, %v1509_v63, %v1512_v6 }
 0x291   : > { %v2329_v0 = vpop.trf.xlu1  ;;  %v1582_v22 = vshrl.u32 %v1513_v11, 16 }
 0x292   : > { %v1527_v1 = vsel %vm352_vm0, %v1526_v16, %v2329_v0  ;;  %v1511_v20 = vsel %vm352_vm0, %v1510_v7, %v1503_v62 }
 0x293   : > { %v1531_v5 = vperm.slane %v1527_v1, %v2471_v10  ;;  %v1574_v28 = vshrl.u32 %v1511_v20, 16 }
 0x295   : > { %v1545_v8 = vsel %vm352_vm0, %v1544_v3, %v1531_v5 }
 0x296   : > { %v1549_v13 = vperm.slane %v1545_v8, %v2476_v25  ;;  %v1651_v8 = vlaneseq }
 0x298   : > { %v1553_v19 = vsel %vm352_vm0, %v1549_v13, %v1552_v17  ;;  %v1550_v23 = vrot.slane %v1549_v13, 4  ;;  %v1656_v13 = vand.u32 127, %v1651_v8 }
 0x299   : > { %v2337_v15 = vpop.trf.xlu1  ;;  %v1580_v24 = vpack.i.b16 %v1553_v19, %v1513_v11  ;;  %v1583_v49 = vshrl.u32 %v1553_v19, 16  ;;  %v1652_v11 = vshrl.u32 %v1651_v8, 7 }
 0x29a   : > { %v1551_v26 = vsel %vm352_vm0, %v1550_v23, %v1543_v2  ;;  %v1406_v37 = vrot.slane %v2337_v15, 4 }
 0x29b   : > { %1628 = vmatpush.bf16.msra.mxu2 %v1580_v24  ;;  %v1572_v52 = vpack.i.b16 %v1551_v26, %v1511_v20  ;;  %v1584_v27 = vpack.i.b16 %v1583_v49, %v1582_v22  ;;  %v1575_v29 = vshrl.u32 %v1551_v26, 16  ;;  %vm1659_vm2 = vcmp.le.s32.totalorder %v1656_v13, %v1652_v11 }
 0x29d   : > { %1596 = vmatpush.bf16.msra.mxu0 %v1572_v52  ;;  %1644 = vmatpush.bf16.msra.mxu3 %v1584_v27  ;;  %v1576_v30 = vpack.i.b16 %v1575_v29, %v1574_v28  ;;  %v2242_v28 = vld [vmem:[%s2178_s28 + $0x8] sm:$0xf]  ;;  %v2410_v29 = vmov -1e+30  }
 0x29e   : > { %290 = vst.msk [vmem:[#allocation2] sm:$0xff] %vm289_vm4, %v2410_v29  ;;  %v405_v47 = vshrl.u32 %v2242_v28, 16 }
 0x29f   : > { %1612 = vmatpush.bf16.msra.mxu1 %v1576_v30  ;;  %291 = vst.msk [vmem:[#allocation2 + $0x8] sm:$0xff] %vm289_vm4, %v2410_v29 }
 0x2a0   : > { %292 = vst.msk [vmem:[#allocation2 + $0x10] sm:$0xff] %vm289_vm4, %v2410_v29 }
 0x2a1   : > { %v2338_v33 = vpop.trf.xlu1  ;;  %293 = vst.msk [vmem:[#allocation2 + $0x18] sm:$0xff] %vm289_vm4, %v2410_v29 }
 0x2a2   : > { %v1446_v53 = vrot.slane %v2338_v33, 4  ;;  %v2412_v33 = vmov 0.0  }
 0x2a3   : > { %301 = vst.msk [vmem:[#allocation4 + $0x10] sm:$0xff] %vm298_vm1, %v2412_v33 }
 0x2a4   : > { %294 = vst.msk [vmem:[#allocation3] sm:$0xff] %vm289_vm4, %v2412_v33 }
 0x2a5   : > { %295 = vst.msk [vmem:[#allocation3 + $0x8] sm:$0xff] %vm289_vm4, %v2412_v33  ;;  %v2756_v18 = vld [vmem:[#allocation2] sm:$0xff] }
 0x2a6   : > { %296 = vst.msk [vmem:[#allocation3 + $0x10] sm:$0xff] %vm289_vm4, %v2412_v33  ;;  %v2758_v12 = vld [vmem:[#allocation2 + $0x8] sm:$0xff] }
 0x2a7   : > { %297 = vst.msk [vmem:[#allocation3 + $0x18] sm:$0xff] %vm289_vm4, %v2412_v33 }
 0x2a8   : > { %299 = vst.msk [vmem:[#allocation4] sm:$0xff] %vm298_vm1, %v2412_v33 }
 0x2a9   : > { %v2340_v41 = vpop.trf.xlu1  ;;  %300 = vst.msk [vmem:[#allocation4 + $0x8] sm:$0xff] %vm298_vm1, %v2412_v33 }
 0x2aa   : > { %v1407_v35 = vsel %vm352_vm0, %v1406_v37, %v2340_v41  ;;  %302 = vst.msk [vmem:[#allocation4 + $0x18] sm:$0xff] %vm298_vm1, %v2412_v33  ;;  %v1668_v41 = vld [vmem:[#allocation2 + $0x10] sm:$0xff] }
 0x2ab   : > { %v1411_v39 = vperm.slane %v1407_v35, %v2471_v10 }
 0x2ad   : > { %v1425_v46 = vsel %vm352_vm0, %v1424_v38, %v1411_v39 }
 0x2ae   : > { %v1429_v44 = vperm.slane %v1425_v46, %v2476_v25 }
 0x2b0   : > { %v1433_v58 = vsel %vm352_vm0, %v1429_v44, %v1432_v45  ;;  %v1430_v54 = vrot.slane %v1429_v44, 4 }
 0x2b1   : > { %v2341_v55 = vpop.trf.xlu1  ;;  %v1566_v0 = vshrl.u32 %v1433_v58, 16 }
 0x2b2   : > { %v1447_v32 = vsel %vm352_vm0, %v1446_v53, %v2341_v55  ;;  %v1431_v36 = vsel %vm352_vm0, %v1430_v54, %v1423_v14 }
 0x2b3   : > { %v1451_v59 = vperm.slane %v1447_v32, %v2471_v10  ;;  %v1558_v5 = vshrl.u32 %v1431_v36, 16 }
 0x2b5   : > { %v1465_v60 = vsel %vm352_vm0, %v1464_v57, %v1451_v59 }
 0x2b6   : > { %v1469_v61 = vperm.slane %v1465_v60, %v2476_v25 }
 0x2b8   : > { %v1473_v16 = vsel %vm352_vm0, %v1469_v61, %v1472_v56  ;;  %v1470_v62 = vrot.slane %v1469_v61, 4 }
 0x2b9   : > { %v1564_v63 = vpack.i.b16 %v1473_v16, %v1433_v58  ;;  %v1567_v1 = vshrl.u32 %v1473_v16, 16 }
 0x2ba   : > { %v1471_v21 = vsel %vm352_vm0, %v1470_v62, %v1463_v9 }
 0x2bb   : > { %1629 = vmatpush.bf16.msra.mxu2 %v1564_v63  ;;  %v1556_v2 = vpack.i.b16 %v1471_v21, %v1431_v36  ;;  %v1568_v3 = vpack.i.b16 %v1567_v1, %v1566_v0  ;;  %v1559_v6 = vshrl.u32 %v1471_v21, 16 }
 0x2bd   : > { %1597 = vmatpush.bf16.msra.mxu0 %v1556_v2  ;;  %1645 = vmatpush.bf16.msra.mxu3 %v1568_v3  ;;  %v1560_v7 = vpack.i.b16 %v1559_v6, %v1558_v5 }
 0x2be   : > { %2245 = vmatmul.msk.bf16.vlgmr.msra.gmra.mxu2 %vm298_vm1, %v2495_v50 }
 0x2bf   : > { %1613 = vmatpush.bf16.msra.mxu1 %v1560_v7 }
 0x2c0   : > { %2243 = vmatmul.msk.bf16.vlgmr.msra.gmra.mxu0 %vm298_vm1, %v2467_v4  ;;  %2246 = vmatmul.msk.bf16.vlgmr.msra.gmra.mxu3 %vm298_vm1, %v2641_v48 }
 0x2c2   : > { %2244 = vmatmul.msk.bf16.vlgmr.msra.gmra.mxu1 %vm298_vm1, %v2643_v51 }
 0x33d   : > { %v1599_v17 = vpop.f32.mrf.mxu0 }
 0x33e   : > { %v2721_v19 = vsel %vm1659_vm2, %v1599_v17, -1e+30 }
 0x33f   : > { %v1615_v20 = vpop.f32.mrf.mxu1  ;;  %v1671_v50 = vsel %vm1670_vm3, %v2721_v19, -inf }
 0x340   : > { %v2725_v4 = vsel %vm1659_vm2, %v1615_v20, -1e+30  ;;  %1672 = vmax.xlane.f32.xlu1 %v1671_v50 }
 0x341   : > { %v1631_v48 = vpop.f32.mrf.mxu2  ;;  %v1674_v51 = vsel %vm1670_vm3, %v2725_v4, -inf }
 0x342   : > { %v2729_v23 = vsel %vm1659_vm2, %v1631_v48, -1e+30  ;;  %1675 = vmax.xlane.f32.xlu2 %v1674_v51 }
 0x343   : > { %v1647_v15 = vpop.f32.mrf.mxu3  ;;  %v1677_v24 = vsel %vm1670_vm3, %v2729_v23, -inf }
 0x344   : > { %v2733_v22 = vsel %vm1659_vm2, %v1647_v15, -1e+30  ;;  %1678 = vmax.xlane.f32.xlu0 %v1677_v24 }
 0x345   : > { %v1601_v49 = vpop.f32.mrf.mxu0  ;;  %v1680_v30 = vsel %vm1670_vm3, %v2733_v22, -inf }
 0x347   : > { %v1617_v26 = vpop.f32.mrf.mxu1 }
 0x349   : > { %v1633_v52 = vpop.f32.mrf.mxu2 }
 0x34b   : > { %v1649_v27 = vpop.f32.mrf.mxu3 }
 0x35a   : > { %396 = vrot.lane.b32.xlu2 %v2242_v28, %s2405_s23 }
 0x362   : > { %398 = vrot.lane.b32.xlu2 %v2242_v28, %s2407_s25 }
 0x36a   : > { %400 = vrot.lane.b32.xlu2 %v2242_v28, %s2406_s24 }
 0x393   : > { %1681 = vmax.xlane.f32.xlu2 %v1680_v30 }
 0x3b3   : > { %v1673_v34 = vpop.xlane.xlu1 %1672 }
 0x3b4   : > { %v2761_v37 = vmax.f32 %v2756_v18, %v1673_v34 }
 0x3b5   : > { %v1676_v40 = vpop.xlane.xlu2 %1675 }
 0x3b6   : > { %v1687_v42 = vsub.f32 %v2756_v18, %v2761_v37  ;;  %1927 = vst.msk [vmem:[#allocation2] sm:$0xff] %vm289_vm4, %v2761_v37  ;;  %v2768_v14 = vmax.f32 %v2758_v12, %v1676_v40  ;;  %1701 = vperm.xlu1 %2354, %v2761_v37   ;;  %v1731_v18 = vld [vmem:[#allocation3] sm:$0xff] }
 0x3b7   : > { %v1679_v35 = vpop.xlane.xlu0 %1678 }
 0x3b8   : > { %1928 = vst.msk [vmem:[#allocation2 + $0x8] sm:$0xff] %vm289_vm4, %v2768_v14  ;;  %v1685_v38 = vmax.f32 %v1668_v41, %v1679_v35 }
 0x3ba   : > { %v1689_v39 = vsub.f32 %v1668_v41, %v1685_v38  ;;  %1929 = vst.msk [vmem:[#allocation2 + $0x10] sm:$0xff] %vm289_vm4, %v1685_v38  ;;  %1711 = vperm.xlu2 %2355, %v1685_v38  }
 0x3bc   : > { %v1695_v43 = vmul.f32 1.442695, %v1689_v39 }
 0x3bd   : > { %v397_v46 = vpop.permute.xlu2 %396 }
 0x3be   : > { %2357 = vpow2.f32 %v1695_v43  ;;  %v406_v53 = vshrl.u32 %v397_v46, 16  ;;  %v404_v58 = vpack.i.b16 %v397_v46, %v2242_v28 }
 0x3c0   : > { %v407_v54 = vpack.i.b16 %v406_v53, %v405_v47  ;;  %v418_v55 = vperm.slane %v404_v58, %v2471_v10 }
 0x3c2   : > { %v444_v32 = vperm.slane %v407_v54, %v2471_v10  ;;  %v426_v60 = vrot.slane %v418_v55, 4 }
 0x3c4   : > { %v2774_v44 = vpop.eup %2357  ;;  %v452_v16 = vrot.slane %v444_v32, 4 }
 0x3c5   : > { %v399_v45 = vpop.permute.xlu2 %398  ;;  %1776 = vperm.xlu1 %2354, %v2774_v44  }
 0x3c6   : > { %v411_v36 = vshrl.u32 %v399_v45, 16 }
 0x3cd   : > { %v401_v9 = vpop.permute.xlu2 %400 }
 0x3ce   : > { %v410_v57 = vpack.i.b16 %v401_v9, %v399_v45  ;;  %v412_v59 = vshrl.u32 %v401_v9, 16 }
 0x3d0   : > { %v413_v61 = vpack.i.b16 %v412_v59, %v411_v36  ;;  %v423_v56 = vperm.slane %v410_v57, %v2471_v10 }
 0x3d2   : > { %v424_v62 = vrot.slane %v423_v56, 4  ;;  %v427_v63 = vsel %vm352_vm0, %v423_v56, %v426_v60  ;;  %v449_v0 = vperm.slane %v413_v61, %v2471_v10 }
 0x3d3   : > { %v435_v1 = vperm.slane %v427_v63, %v2476_v25 }
 0x3d4   : > { %v425_v21 = vsel %vm352_vm0, %v424_v62, %v418_v55  ;;  %v450_v2 = vrot.slane %v449_v0, 4  ;;  %v453_v3 = vsel %vm352_vm0, %v449_v0, %v452_v16  ;;  %v1669_v16 = vld [vmem:[#allocation2 + $0x18] sm:$0xff] }
 0x3d5   : > { %v431_v5 = vperm.slane %v425_v21, %v2476_v25  ;;  %v438_v6 = vrot.slane %v435_v1, 4  ;;  %v461_v7 = vperm.slane %v453_v3, %v2476_v25  ;;  %v1688_v21 = vsub.f32 %v2758_v12, %v2768_v14 }
 0x3d6   : > { %v451_v8 = vsel %vm352_vm0, %v450_v2, %v444_v32 }
 0x3d7   : > { %v436_v11 = vrot.slane %v431_v5, 4  ;;  %v439_v13 = vsel %vm352_vm0, 0, %v438_v6  ;;  %v457_v17 = vperm.slane %v451_v8, %v2476_v25  ;;  %v464_v20 = vrot.slane %v461_v7, 4 }
 0x3d8   : > { %v1797_v50 = vrot.slane %v439_v13, 4  ;;  %v1792_v49 = vsel %vm352_vm0, %v438_v6, %v431_v5  ;;  %v1693_v2 = vmul.f32 1.442695, %v1688_v21 }
 0x3d9   : > { %v437_v48 = vsel %vm352_vm0, 0, %v436_v11  ;;  %v462_v51 = vrot.slane %v457_v17, 4  ;;  %v465_v15 = vsel %vm352_vm0, 0, %v464_v20  ;;  %v1811_v28 = vsel %vm352_vm0, %v464_v20, %v457_v17 }
 0x3da   : > { %v1816_v24 = vrot.slane %v465_v15, 4  ;;  %v1798_v26 = vsel %vm352_vm0, %v1797_v50, %v437_v48  ;;  %v1796_v30 = vperm.slane %v1792_v49, %v2471_v10  ;;  %v1815_v40 = vperm.slane %v1811_v28, %v2471_v10 }
 0x3db   : > { %v463_v52 = vsel %vm352_vm0, 0, %v462_v51  ;;  %v1802_v27 = vperm.slane %v1798_v26, %v2471_v10 }
 0x3dc   : > { %v1817_v29 = vsel %vm352_vm0, %v1816_v24, %v463_v52 }
 0x3dd   : > { %v1803_v31 = vrot.slane %v1802_v27, 4  ;;  %v1821_v33 = vperm.slane %v1817_v29, %v2471_v10 }
 0x3df   : > { %v1804_v34 = vsel %vm352_vm0, %v1803_v31, %v1796_v30  ;;  %v1822_v41 = vrot.slane %v1821_v33, 4  ;;  %v1733_v33 = vld [vmem:[#allocation3 + $0x10] sm:$0xff] }
 0x3e0   : > { %v1808_v35 = vperm.slane %v1804_v34, %v2476_v25  ;;  %v1737_v34 = vmul.f32 %v2774_v44, %v1733_v33 }
 0x3e1   : > { %v1823_v38 = vsel %vm352_vm0, %v1822_v41, %v1815_v40 }
 0x3e2   : > { %v1827_v39 = vperm.slane %v1823_v38, %v2476_v25  ;;  %v1809_v43 = vrot.slane %v1808_v35, 4  ;;  %v1833_v46 = vshrl.u32 %v1808_v35, 16  ;;  %v1762_v38 = vld [vmem:[#allocation4 + $0x10] sm:$0xff] }
 0x3e4   : > { %v1832_v45 = vpack.i.b16 %v1827_v39, %v1808_v35  ;;  %v1834_v47 = vshrl.u32 %v1827_v39, 16  ;;  %v1810_v53 = vsel %vm352_vm0, 0, %v1809_v43  ;;  %v1828_v58 = vrot.slane %v1827_v39, 4 }
 0x3e5   : > { %v1839_v36 = vshrl.u32 %v1810_v53, 16 }
 0x3e6   : > { %v1847_v54 = vsel %vm1845_vm5, %v1832_v45, 0  ;;  %v1835_v55 = vpack.i.b16 %v1834_v47, %v1833_v46  ;;  %v1829_v9 = vsel %vm352_vm0, 0, %v1828_v58 }
 0x3e7   : > { %1856 = vmatpush.bf16.msrb.mxu0 %v1847_v54  ;;  %v1838_v32 = vpack.i.b16 %v1829_v9, %v1810_v53  ;;  %v1840_v57 = vshrl.u32 %v1829_v9, 16 }
 0x3e8   : > { %v1866_v59 = vsel %vm1845_vm5, %v1835_v55, 0 }
 0x3e9   : > { %1875 = vmatpush.bf16.msrb.mxu1 %v1866_v59  ;;  %v1885_v60 = vsel %vm1845_vm5, %v1838_v32, 0  ;;  %v1841_v61 = vpack.i.b16 %v1840_v57, %v1839_v36  ;;  %v1734_v32 = vld [vmem:[#allocation3 + $0x18] sm:$0xff] }
 0x3ea   : > { %1894 = vmatpush.bf16.msrb.mxu2 %v1885_v60  ;;  %v1732_v60 = vld [vmem:[#allocation3 + $0x8] sm:$0xff] }
 0x3eb   : > { %v1904_v56 = vsel %vm1845_vm5, %v1841_v61, 0 }
 0x3ec   : > { %1913 = vmatpush.bf16.msrb.mxu3 %v1904_v56 }
 0x406   : > { %v1682_v62 = vpop.xlane.xlu2 %1681 }
 0x407   : > { %v1686_v63 = vmax.f32 %v1669_v16, %v1682_v62 }
 0x409   : > { %v1690_v0 = vsub.f32 %v1669_v16, %v1686_v63  ;;  %1930 = vst.msk [vmem:[#allocation2 + $0x18] sm:$0xff] %vm289_vm4, %v1686_v63  ;;  %1716 = vperm.xlu2 %2355, %v1686_v63  }
 0x40b   : > { %v1697_v1 = vmul.f32 1.442695, %v1690_v0  ;;  %v1763_v0 = vld [vmem:[#allocation4 + $0x18] sm:$0xff] }
 0x40d   : > { %2359 = vpow2.f32 %v1697_v1  ;;  %v1761_v1 = vld [vmem:[#allocation4 + $0x8] sm:$0xff] }
 0x40e   : > { %2361 = vpow2.f32 %v1693_v2 }
 0x411   : > { %1706 = vperm.xlu2 %2355, %v2768_v14  }
 0x413   : > { %v2815_v3 = vpop.eup %2359 }
 0x414   : > { %v1712_v5 = vpop.permute.xlu2 %1711  ;;  %1781 = vperm.xlu1 %2354, %v2815_v3   ;;  %v2819_v8 = vpop.eup %2361  ;;  %v1738_v36 = vmul.f32 %v2815_v3, %v1734_v32 }
 0x415   : > { %v1721_v6 = vsub.f32 %v2729_v23, %v1712_v5  ;;  %v1736_v56 = vmul.f32 %v2819_v8, %v1732_v60 }
 0x417   : > { %v1727_v7 = vmul.f32 1.442695, %v1721_v6 }
 0x419   : > { %2363 = vpow2.f32 %v1727_v7 }
 0x41c   : > { %1771 = vperm.xlu1 %2354, %v2819_v8  }
 0x41f   : > { %v2364_v11 = vpop.eup %2363 }
 0x420   : > { %v1745_v12 = vsel %vm1670_vm3, %v2364_v11, 0.0  ;;  %v1790_v13 = vpack.c.bf16 %v2364_v11, %v2364_v11 }
 0x421   : > { %1746 = vadd.xlane.f32.xlu0 %v1745_v12 }
 0x422   : > { %2249 = vmatmul.msk.bf16.vlgmr.msrb.gmra.mxu2 %vm1670_vm3, %v1790_v13 }
 0x428   : > { %v1702_v14 = vpop.permute.xlu1 %1701 }
 0x429   : > { %v1719_v17 = vsub.f32 %v2721_v19, %v1702_v14 }
 0x42b   : > { %v1723_v20 = vmul.f32 1.442695, %v1719_v17  ;;  %v1760_v17 = vld [vmem:[#allocation4] sm:$0xff] }
 0x42d   : > { %2365 = vpow2.f32 %v1723_v20 }
 0x433   : > { %v2366_v50 = vpop.eup %2365 }
 0x434   : > { %v1788_v23 = vpack.c.bf16 %v2366_v50, %v2366_v50  ;;  %v1739_v48 = vsel %vm1670_vm3, %v2366_v50, 0.0 }
 0x436   : > { %2247 = vmatmul.msk.bf16.vlgmr.msrb.gmra.mxu0 %vm1670_vm3, %v1788_v23 }
 0x437   : > { %v1777_v39 = vpop.permute.xlu1 %1776 }
 0x438   : > { %v1786_v43 = vmul.f32 %v1777_v39, %v1762_v38 }
 0x43a   : > { %1740 = vadd.xlane.f32.xlu2 %v1739_v48 }
 0x463   : > { %v1717_v51 = vpop.permute.xlu2 %1716 }
 0x464   : > { %v1722_v15 = vsub.f32 %v2733_v22, %v1717_v51 }
 0x466   : > { %v1729_v24 = vmul.f32 1.442695, %v1722_v15 }
 0x468   : > { %2367 = vpow2.f32 %v1729_v24 }
 0x46b   : > { %v1707_v49 = vpop.permute.xlu2 %1706 }
 0x46c   : > { %v1720_v26 = vsub.f32 %v2725_v4, %v1707_v49  ;;  %v1691_v4 = vmul.f32 1.442695, %v1687_v42 }
 0x46e   : > { %v2368_v52 = vpop.eup %2367  ;;  %v1725_v27 = vmul.f32 1.442695, %v1720_v26 }
 0x46f   : > { %v1748_v19 = vsel %vm1670_vm3, %v2368_v52, 0.0  ;;  %v1791_v28 = vpack.c.bf16 %v2368_v52, %v2368_v52 }
 0x470   : > { %2369 = vpow2.f32 %v1725_v27  ;;  %1749 = vadd.xlane.f32.xlu0 %v1748_v19 }
 0x471   : > { %2250 = vmatmul.msk.bf16.vlgmr.msrb.gmra.mxu3 %vm1670_vm3, %v1791_v28  ;;  %2371 = vpow2.f32 %v1691_v4 }
 0x476   : > { %v2370_v29 = vpop.eup %2369 }
 0x477   : > { %v1742_v30 = vsel %vm1670_vm3, %v2370_v29, 0.0  ;;  %v1789_v31 = vpack.c.bf16 %v2370_v29, %v2370_v29  ;;  %v2372_v22 = vpop.eup %2371 }
 0x478   : > { %1743 = vadd.xlane.f32.xlu0 %v1742_v30  ;;  %v1735_v37 = vmul.f32 %v2372_v22, %v1731_v18 }
 0x479   : > { %2248 = vmatmul.msk.bf16.vlgmr.msrb.gmra.mxu1 %vm1670_vm3, %v1789_v31 }
 0x486   : > { %v1782_v61 = vpop.permute.xlu1 %1781 }
 0x487   : > { %v1787_v2 = vmul.f32 %v1782_v61, %v1763_v0 }
 0x48c   : > { %1766 = vperm.xlu0 %2356, %v2372_v22  }
 0x48e   : > { %v1772_v21 = vpop.permute.xlu1 %1771 }
 0x48f   : > { %v1785_v6 = vmul.f32 %v1772_v21, %v1761_v1 }
 0x494   : > { %v1747_v40 = vpop.xlane.xlu0 %1746 }
 0x495   : > { %v1753_v41 = vadd.f32 %v1747_v40, %v1737_v34 }
 0x497   : > { %1758 = vst.msk [vmem:[#allocation3 + $0x10] sm:$0xff] %vm289_vm4, %v1753_v41 }
 0x49e   : > { %v1940_v35 = vld [vmem:[#allocation3 + $0x10] sm:$0xff] }
 0x49f   : > { %2373 = vrcp.f32 %v1940_v35 }
 0x4a5   : > { %v2374_v46 = vpop.eup %2373  ;;  %v1896_v45 = vpop.f32.mrf.mxu2 }
 0x4a6   : > { %v1921_v47 = vadd.f32 %v1896_v45, %v1786_v43  ;;  %1958 = vperm.xlu1 %2354, %v2374_v46  }
 0x4a8   : > { %1925 = vst.msk [vmem:[#allocation4 + $0x10] sm:$0xff] %vm298_vm1, %v1921_v47 }
 0x4ad   : > { %v1898_v42 = vpop.f32.mrf.mxu2  ;;  %v1741_v53 = vpop.xlane.xlu2 %1740 }
 0x4ae   : > { %v1751_v44 = vadd.f32 %v1741_v53, %v1735_v37 }
 0x4af   : > { %v1936_v15 = vld [vmem:[#allocation4 + $0x10] sm:$0xff] }
 0x4b0   : > { %1756 = vst.msk [vmem:[#allocation3] sm:$0xff] %vm289_vm4, %v1751_v44 }
 0x4b3   : > { %v1858_v58 = vpop.f32.mrf.mxu0 }
 0x4b7   : > { %v1938_v54 = vld [vmem:[#allocation3] sm:$0xff] }
 0x4b8   : > { %2375 = vrcp.f32 %v1938_v54 }
 0x4bb   : > { %v1860_v55 = vpop.f32.mrf.mxu0 }
 0x4be   : > { %v2376_v9 = vpop.eup %2375 }
 0x4bf   : > { %1948 = vperm.xlu2 %2355, %v2376_v9  }
 0x4e3   : > { %v1750_v57 = vpop.xlane.xlu0 %1749 }
 0x4e4   : > { %v1754_v59 = vadd.f32 %v1750_v57, %v1738_v36 }
 0x4e6   : > { %1759 = vst.msk [vmem:[#allocation3 + $0x18] sm:$0xff] %vm289_vm4, %v1754_v59 }
 0x4eb   : > { %v1744_v16 = vpop.xlane.xlu0 %1743 }
 0x4ec   : > { %v1752_v62 = vadd.f32 %v1744_v16, %v1736_v56 }
 0x4ed   : > { %v1941_v63 = vld [vmem:[#allocation3 + $0x18] sm:$0xff] }
 0x4ee   : > { %1757 = vst.msk [vmem:[#allocation3 + $0x8] sm:$0xff] %vm289_vm4, %v1752_v62  ;;  %2377 = vrcp.f32 %v1941_v63 }
 0x4f4   : > { %v2378_v5 = vpop.eup %2377  ;;  %v1915_v3 = vpop.f32.mrf.mxu3 }
 0x4f5   : > { %v1922_v7 = vadd.f32 %v1915_v3, %v1787_v2  ;;  %1963 = vperm.xlu1 %2354, %v2378_v5   ;;  %v1939_v11 = vld [vmem:[#allocation3 + $0x8] sm:$0xff] }
 0x4f6   : > { %v1877_v12 = vpop.f32.mrf.mxu1  ;;  %2379 = vrcp.f32 %v1939_v11 }
 0x4f7   : > { %1926 = vst.msk [vmem:[#allocation4 + $0x18] sm:$0xff] %vm298_vm1, %v1922_v7  ;;  %v1920_v8 = vadd.f32 %v1877_v12, %v1785_v6 }
 0x4f9   : > { %1924 = vst.msk [vmem:[#allocation4 + $0x8] sm:$0xff] %vm298_vm1, %v1920_v8 }
 0x4fc   : > { %v2380_v13 = vpop.eup %2379  ;;  %v1917_v14 = vpop.f32.mrf.mxu3 }
 0x4fd   : > { %1953 = vperm.xlu1 %2354, %v2380_v13  }
 0x4fe   : > { %v1879_v20 = vpop.f32.mrf.mxu1  ;;  %v1767_v50 = vpop.permute.xlu0 %1766  ;;  %v1937_v29 = vld [vmem:[#allocation4 + $0x18] sm:$0xff] }
 0x4ff   : > { %v1784_v23 = vmul.f32 %v1767_v50, %v1760_v17 }
 0x500   : > { %v1935_v33 = vld [vmem:[#allocation4 + $0x8] sm:$0xff] }
 0x501   : > { %v1919_v48 = vadd.f32 %v1858_v58, %v1784_v23 }
 0x503   : > { %1923 = vst.msk [vmem:[#allocation4] sm:$0xff] %vm298_vm1, %v1919_v48 }
 0x50a   : > { %v1934_v26 = vld [vmem:[#allocation4] sm:$0xff] }
 0x518   : > { %v1959_v51 = vpop.permute.xlu1 %1958 }
 0x519   : > { %v1949_v24 = vpop.permute.xlu2 %1948  ;;  %v1968_v49 = vmul.f32 %v1959_v51, %v1936_v15 }
 0x51a   : > { %v1966_v52 = vmul.f32 %v1949_v24, %v1934_v26 }
 0x51b   : > { %v1970_v19 = vrot.slane %v1968_v49, 4 }
 0x51c   : > { %v1973_v28 = vrot.slane %v1966_v52, 4 }
 0x51d   : > { %v1972_v30 = vsel %vm352_vm0, %v1970_v19, %v1966_v52 }
 0x51e   : > { %v1974_v4 = vsel %vm352_vm0, %v1968_v49, %v1973_v28  ;;  %v1978_v22 = vperm.slane %v1972_v30, %v2471_v10 }
 0x51f   : > { %v1982_v35 = vperm.slane %v1974_v4, %v2471_v10 }
 0x520   : > { %v1997_v43 = vrot.slane %v1978_v22, 4 }
 0x521   : > { %v2009_v47 = vrot.slane %v1982_v35, 4 }
 0x567   : > { %v1964_v27 = vpop.permute.xlu1 %1963 }
 0x568   : > { %v1969_v31 = vmul.f32 %v1964_v27, %v1937_v29 }
 0x56a   : > { %v1983_v40 = vrot.slane %v1969_v31, 4 }
 0x56f   : > { %v1954_v34 = vpop.permute.xlu1 %1953 }
 0x570   : > { %v1967_v41 = vmul.f32 %v1954_v34, %v1935_v33 }
 0x572   : > { %v1984_v38 = vsel %vm352_vm0, %v1983_v40, %v1967_v41  ;;  %v1985_v39 = vrot.slane %v1967_v41, 4 }
 0x573   : > { %v1990_v46 = vperm.slane %v1984_v38, %v2471_v10 }
 0x574   : > { %v1986_v45 = vsel %vm352_vm0, %v1969_v31, %v1985_v39 }
 0x575   : > { %v1994_v18 = vperm.slane %v1986_v45, %v2471_v10  ;;  %v1995_v37 = vrot.slane %v1990_v46, 4  ;;  %v1998_v42 = vsel %vm352_vm0, %v1990_v46, %v1997_v43 }
 0x576   : > { %v2006_v53 = vperm.slane %v1998_v42, %v2476_v25 }
 0x577   : > { %v1996_v44 = vsel %vm352_vm0, %v1995_v37, %v1978_v22  ;;  %v2007_v58 = vrot.slane %v1994_v18, 4  ;;  %v2010_v54 = vsel %vm352_vm0, %v1994_v18, %v2009_v47 }
 0x578   : > { %v2002_v55 = vperm.slane %v1996_v44, %v2476_v25  ;;  %v2018_v9 = vperm.slane %v2010_v54, %v2476_v25  ;;  %v2021_v32 = vrot.slane %v2006_v53, 4 }
 0x579   : > { %v2008_v36 = vsel %vm352_vm0, %v2007_v58, %v1982_v35 }
 0x57a   : > { %v2014_v57 = vperm.slane %v2008_v36, %v2476_v25  ;;  %v2019_v59 = vrot.slane %v2002_v55, 4  ;;  %v2022_v60 = vsel %vm352_vm0, 0.0, %v2021_v32  ;;  %v2025_v61 = vrot.slane %v2018_v9, 4 }
 0x57b   : > { %v2032_v56 = vrot.slane %v2022_v60, 4  ;;  %v2027_v16 = vsel %vm352_vm0, %v2021_v32, %v2002_v55 }
 0x57c   : > { %v2023_v62 = vrot.slane %v2014_v57, 4  ;;  %v2026_v63 = vsel %vm352_vm0, 0.0, %v2025_v61  ;;  %v2020_v0 = vsel %vm352_vm0, 0.0, %v2019_v59  ;;  %v2031_v1 = vperm.slane %v2027_v16, %v2471_v10 }
 0x57d   : > { %v2043_v21 = vrot.slane %v2026_v63, 4  ;;  %v2033_v2 = vsel %vm352_vm0, %v2032_v56, %v2020_v0  ;;  %v2038_v5 = vsel %vm352_vm0, %v2025_v61, %v2014_v57 }
 0x57e   : > { %v2024_v3 = vsel %vm352_vm0, 0.0, %v2023_v62  ;;  %v2037_v6 = vperm.slane %v2033_v2, %v2471_v10  ;;  %v2042_v7 = vperm.slane %v2038_v5, %v2471_v10  ;;  %v2051_v11 = vrot.slane %v2031_v1, 4 }
 0x57f   : > { %v2044_v12 = vsel %vm352_vm0, %v2043_v21, %v2024_v3 }
 0x580   : > { %v2048_v8 = vperm.slane %v2044_v12, %v2471_v10  ;;  %v2063_v13 = vrot.slane %v2042_v7, 4  ;;  %v2049_v14 = vrot.slane %v2037_v6, 4  ;;  %v2052_v17 = vsel %vm352_vm0, %v2037_v6, %v2051_v11 }
 0x581   : > { %v2060_v24 = vperm.slane %v2052_v17, %v2476_v25 }
 0x582   : > { %v2064_v20 = vsel %vm352_vm0, %v2048_v8, %v2063_v13  ;;  %v2050_v50 = vsel %vm352_vm0, %v2049_v14, %v2031_v1  ;;  %v2061_v23 = vrot.slane %v2048_v8, 4 }
 0x583   : > { %v2072_v48 = vperm.slane %v2064_v20, %v2476_v25  ;;  %v2056_v51 = vperm.slane %v2050_v50, %v2476_v25  ;;  %v2079_v29 = vrot.slane %v2060_v24, 4 }
 0x584   : > { %v2062_v15 = vsel %vm352_vm0, %v2061_v23, %v2042_v7 }
 0x585   : > { %v2077_v49 = vrot.slane %v2072_v48, 4  ;;  %v2068_v10 = vperm.slane %v2062_v15, %v2476_v25  ;;  %v2075_v26 = vrot.slane %v2056_v51, 4  ;;  %v2080_v30 = vsel %vm352_vm0, %v2072_v48, %v2079_v29 }
 0x587   : > { %v2078_v52 = vsel %vm352_vm0, %v2077_v49, %v2060_v24  ;;  %v2073_v27 = vrot.slane %v2068_v10, 4  ;;  %v2076_v19 = vsel %vm352_vm0, %v2068_v10, %v2075_v26 }
 0x588   : > { %2086 = vrot.lane.b32.xlu1 %v2078_v52, %s2407_s25  ;;  %2082 = vrot.lane.b32.xlu0 %v2076_v19, %s2406_s24 }
 0x589   : > { %v2074_v28 = vsel %vm352_vm0, %v2073_v27, %v2056_v51 }
 0x590   : > { %2090 = vrot.lane.b32.xlu0 %v2080_v30, %s2405_s23 }
 0x5fa   : > { %v2083_v31 = vpop.permute.xlu0 %2082  ;;  %v2087_v4 = vpop.permute.xlu1 %2086 }
 0x5fb   : > { %v2094_v25 = vsel %vm298_vm1, %v2074_v28, %v2083_v31 }
 0x5fc   : > { %v2096_v33 = vsel %vm2095_vm6, %v2094_v25, %v2087_v4 }
 0x602   : > { %v2091_v22 = vpop.permute.xlu0 %2090 }
 0x603   : > { %v2098_v34 = vsel %vm2097_vm7, %v2096_v33, %v2091_v22 }
 0x604   : > { %v2099_v40 = vpack.c.bf16 %v2098_v34, %v2098_v34 }
 0x606   : > { %2100 = vst [vmem:[%s283_s5] sm:$0xf] %v2099_v40 }
 0x607 PF: > { %s13_s14 = sadd.s32 1, %s2403_s14   ;;  %s2908_s12 = smov %s2399_s13 }
 0x608   : > { %p10_p5 = scmp.ge.s32.totalorder %s13_s14, 4   ;;  %s2909_s13 = smov %s2911_s15 }
 0x60a   :  { %12 = sbr.rel (!%p10_p5) target bundleno = 2 (0x2), region = 80 }

</bundles_post_ra>
